<compile_context>
chip_gen: v5e
topology: v5e:2x2
jax: 0.10.0
libtpu: 0.0.40
codegen_flags: <defaults>
</compile_context>

<pallas_src>
import jax
import jax.numpy as jnp
from jax.experimental import pallas as pl
from jax.experimental.pallas import tpu as pltpu

# Small shapes consistent with the module
VOCAB = 64          # input_size (embedding vocab, unused in forward)
E = 32              # embedding_size
H = 32              # hidden_size
FC = 64             # fc_1 width (fixed at 64 in the module)
O = 16              # output_size
G = 4 * H           # gate width = 128 lanes (exactly one vreg wide)
T = 8               # sequence length used by the driver

# Row layout of the packed weight slab (all sections 128 lanes wide)
R_W0 = 0                      # fused [W_ih0; W_hh0]^T : (E+H, 4H)
R_W1 = R_W0 + (E + H)         # fused [W_ih1; W_hh1]^T : (2H, 4H)
R_WFC1 = R_W1 + 2 * H         # fc_1 weight, lane-padded : (H, 128)
R_WFC2 = R_WFC1 + H           # fc_2 weight, padded      : (128, 128)
R_BIAS = R_WFC2 + G           # 8 bias rows: b0, b1, b_fc1, b_fc2, 0, 0, 0, 0
SLAB_ROWS = R_BIAS + 8        # 296


def lstm_net_seq_kernel(seq_ref, state_ref, w_ref, out_ref):
    """Full T-step 2-layer LSTM recurrence + fc head + log_softmax in VMEM."""
    n_steps = seq_ref.shape[0]

    # ---- weights: one slab, static sublane slices (loaded once per call) ----
    w0 = w_ref[R_W0:R_W0 + E + H, :]            # (E+H, 4H)
    w1 = w_ref[R_W1:R_W1 + 2 * H, :]            # (2H, 4H)
    wfc1 = w_ref[R_WFC1:R_WFC1 + H, :]          # (H, 128)  lanes [FC:) zero
    wfc2 = w_ref[R_WFC2:R_WFC2 + G, :]          # (128,128) rows [FC:) / lanes [O:) zero
    b0 = w_ref[R_BIAS + 0:R_BIAS + 1, :]        # (1, 4H)
    b1 = w_ref[R_BIAS + 1:R_BIAS + 2, :]
    bfc1 = w_ref[R_BIAS + 2:R_BIAS + 3, :]
    bfc2 = w_ref[R_BIAS + 3:R_BIAS + 4, :]

    # ---- initial hidden/cell state (lanes [0:H) of rows 0..3) ----
    h0 = state_ref[0:1, 0:H]
    c0 = state_ref[1:2, 0:H]
    h1 = state_ref[2:3, 0:H]
    c1 = state_ref[3:4, 0:H]

    def cell(xh, c_prev, w, b):
        # single fused matmul per cell: (1, in+H) @ (in+H, 4H)
        gates = jnp.dot(xh, w, preferred_element_type=jnp.float32) + b
        # gate columns were permuted at pack time to (i, f, o, g):
        sg = jax.nn.sigmoid(gates[:, 0:3 * H])       # one EUP pass over i|f|o
        g = jnp.tanh(gates[:, 3 * H:4 * H])          # one EUP pass over g
        i = sg[:, 0:H]
        f = sg[:, H:2 * H]
        o = sg[:, 2 * H:3 * H]
        c_new = f * c_prev + i * g
        h_new = o * jnp.tanh(c_new)
        return h_new, c_new

    def step(t, carry):
        h0, c0, h1, c1 = carry
        x = seq_ref[pl.ds(t, 1), :]                  # (1, E)
        h0, c0 = cell(jnp.concatenate([x, h0], axis=1), c0, w0, b0)
        h1, c1 = cell(jnp.concatenate([h0, h1], axis=1), c1, w1, b1)
        return (h0, c0, h1, c1)

    h0, c0, h1, c1 = jax.lax.fori_loop(
        0, n_steps, step, (h0, c0, h1, c1), unroll=True)

    # ---- fc head + log_softmax on the final hidden state of layer 1 ----
    fc1 = jnp.dot(h1, wfc1, preferred_element_type=jnp.float32) + bfc1   # lanes [FC:) == 0
    fc2 = jnp.dot(fc1, wfc2, preferred_element_type=jnp.float32) + bfc2  # lanes [O:)  == 0

    lane = jax.lax.broadcasted_iota(jnp.int32, (1, G), 1)
    valid = lane < O
    m = jnp.max(jnp.where(valid, fc2, -jnp.inf), axis=1, keepdims=True)
    z = fc2 - m
    denom = jnp.sum(jnp.where(valid, jnp.exp(z), 0.0), axis=1, keepdims=True)
    logp = z - jnp.log(denom)

    # ---- single lane-dense (8, 128) output: logp + new (h, c) ----
    zpad = jnp.zeros((1, G - H), jnp.float32)
    out_ref[0:1, :] = jnp.where(valid, logp, 0.0)
    out_ref[1:2, :] = jnp.concatenate([h0, zpad], axis=1)
    out_ref[2:3, :] = jnp.concatenate([c0, zpad], axis=1)
    out_ref[3:4, :] = jnp.concatenate([h1, zpad], axis=1)
    out_ref[4:5, :] = jnp.concatenate([c1, zpad], axis=1)
    out_ref[5:8, :] = jnp.zeros((3, G), jnp.float32)


@jax.jit
def lstm_net_forward_seq(seq, hidden, slab):
    """Run the full sequence through the fused kernel.

    seq:    (T, E) float32 per-step embedding vectors ("done" inputs)
    hidden: ((2, 1, H), (2, 1, H)) initial (h, c)   -- initHidden() gives zeros
    slab:   packed weight slab from pack_params()

    Returns (log_probs (1, O) for the final step, new_hidden).
    """
    h, c = hidden
    state = jnp.zeros((8, G), jnp.float32)
    state = state.at[0, 0:H].set(h[0, 0])
    state = state.at[1, 0:H].set(c[0, 0])
    state = state.at[2, 0:H].set(h[1, 0])
    state = state.at[3, 0:H].set(c[1, 0])

    vmem = pl.BlockSpec(memory_space=pltpu.MemorySpace.VMEM)
    out = pl.pallas_call(
        lstm_net_seq_kernel,
        out_shape=jax.ShapeDtypeStruct((8, G), jnp.float32),
        in_specs=[vmem, vmem, vmem],
        out_specs=vmem,
    )(seq, state, slab)

    logp = out[0:1, 0:O]
    new_h = jnp.stack([out[1, 0:H], out[3, 0:H]], axis=0)[:, None, :]   # (2,1,H)
    new_c = jnp.stack([out[2, 0:H], out[4, 0:H]], axis=0)[:, None, :]   # (2,1,H)
    return logp, (new_h, new_c)


def pack_params(p):
    """Pack torch-layout parameters into one lane-dense (296, 128) f32 slab.

    Per LSTM layer: W = [W_ih ; W_hh] fused over the contraction dim, gate
    rows permuted from torch order (i, f, g, o) to (i, f, o, g), stored
    transposed as (in+H, 4H). fc weights are stored transposed and lane-padded
    to 128. Biases live in the last 8 rows.
    """
    perm = jnp.concatenate([jnp.arange(0, 2 * H),        # i, f
                            jnp.arange(3 * H, 4 * H),    # o
                            jnp.arange(2 * H, 3 * H)])   # g

    def fuse(w_ih, w_hh, b_ih, b_hh):
        w = jnp.concatenate([w_ih, w_hh], axis=1)[perm]   # (4H, in+H)
        b = (b_ih + b_hh)[perm]                           # (4H,)
        return w.T.astype(jnp.float32), b.astype(jnp.float32)

    w0, b0 = fuse(p["w_ih0"], p["w_hh0"], p["b_ih0"], p["b_hh0"])   # (E+H, 4H)
    w1, b1 = fuse(p["w_ih1"], p["w_hh1"], p["b_ih1"], p["b_hh1"])   # (2H, 4H)

    wfc1 = jnp.zeros((H, G), jnp.float32).at[:, :FC].set(p["w_fc1"].T)
    wfc2 = jnp.zeros((G, G), jnp.float32).at[:FC, :O].set(p["w_fc2"].T)
    bfc1 = jnp.zeros((G,), jnp.float32).at[:FC].set(p["b_fc1"])
    bfc2 = jnp.zeros((G,), jnp.float32).at[:O].set(p["b_fc2"])

    bias_block = jnp.zeros((8, G), jnp.float32)
    bias_block = bias_block.at[0].set(b0).at[1].set(b1)
    bias_block = bias_block.at[2].set(bfc1).at[3].set(bfc2)

    slab = jnp.concatenate([w0, w1, wfc1, wfc2, bias_block], axis=0)
    assert slab.shape == (SLAB_ROWS, G)
    return slab


def reference_forward(seq, hidden, p):
    """Pure-JAX reference of the PyTorch forward recurrence (torch layouts)."""
    h, c = hidden
    h0, h1 = h[0], h[1]
    c0, c1 = c[0], c[1]

    def cell(x, h_prev, c_prev, w_ih, w_hh, b_ih, b_hh):
        gates = x @ w_ih.T + h_prev @ w_hh.T + b_ih + b_hh   # (1, 4H), (i,f,g,o)
        i = jax.nn.sigmoid(gates[:, 0:H])
        f = jax.nn.sigmoid(gates[:, H:2 * H])
        g = jnp.tanh(gates[:, 2 * H:3 * H])
        o = jax.nn.sigmoid(gates[:, 3 * H:4 * H])
        c_new = f * c_prev + i * g
        return o * jnp.tanh(c_new), c_new

    for t in range(seq.shape[0]):
        x = seq[t:t + 1]
        h0, c0 = cell(x, h0, c0, p["w_ih0"], p["w_hh0"], p["b_ih0"], p["b_hh0"])
        h1, c1 = cell(h0, h1, c1, p["w_ih1"], p["w_hh1"], p["b_ih1"], p["b_hh1"])

    fc1 = h1 @ p["w_fc1"].T + p["b_fc1"]
    fc2 = fc1 @ p["w_fc2"].T + p["b_fc2"]
    logp = jax.nn.log_softmax(fc2, axis=1)
    return logp, (jnp.stack([h0, h1], axis=0), jnp.stack([c0, c1], axis=0))


def init_params(key):
    """Deterministic params in PyTorch layout with PyTorch-style default init."""
    ks = jax.random.split(key, 13)

    def u(k, shape, bound):
        return jax.random.uniform(k, shape, jnp.float32, -bound, bound)

    s_lstm = 1.0 / (H ** 0.5)
    s_fc1 = 1.0 / (H ** 0.5)
    s_fc2 = 1.0 / (FC ** 0.5)

    return {
        # nn.Embedding(input_size, embedding_size) -- never used in forward()
        "embeddings": jax.random.normal(ks[0], (VOCAB, E), jnp.float32),
        # LSTM layer 0, torch layout (4H, in), gate order (i, f, g, o)
        "w_ih0": u(ks[1], (4 * H, E), s_lstm),
        "w_hh0": u(ks[2], (4 * H, H), s_lstm),
        "b_ih0": u(ks[3], (4 * H,), s_lstm),
        "b_hh0": u(ks[4], (4 * H,), s_lstm),
        # LSTM layer 1 (input dim = H)
        "w_ih1": u(ks[5], (4 * H, H), s_lstm),
        "w_hh1": u(ks[6], (4 * H, H), s_lstm),
        "b_ih1": u(ks[7], (4 * H,), s_lstm),
        "b_hh1": u(ks[8], (4 * H,), s_lstm),
        # fc_1 = Linear(H, 64), fc_2 = Linear(64, O), torch layout (out, in)
        "w_fc1": u(ks[9], (FC, H), s_fc1),
        "b_fc1": u(ks[10], (FC,), s_fc1),
        "w_fc2": u(ks[11], (O, FC), s_fc2),
        "b_fc2": u(ks[12], (O,), s_fc2),
    }


if __name__ == "__main__":
    key = jax.random.PRNGKey(0)
    kp, kx = jax.random.split(key)
    params = init_params(kp)
    slab = pack_params(params)

    # initHidden(): zeros of shape (2, 1, H) for both h and c
    hidden0 = (jnp.zeros((2, 1, H), jnp.float32),
               jnp.zeros((2, 1, H), jnp.float32))

    # "done" embedding vector per step; 8-step sequence, processed in ONE kernel
    seq = jax.random.normal(kx, (T, E), jnp.float32)

    logp, hidden = lstm_net_forward_seq(seq, hidden0, slab)
    logp = jax.block_until_ready(logp)
    hidden = jax.block_until_ready(hidden)

    # correctness: compare with pure-JAX reference of the torch recurrence
    ref_logp, ref_hidden = reference_forward(seq, hidden0, params)

    assert logp.shape == (1, O)
    assert bool(jnp.allclose(jnp.sum(jnp.exp(logp), axis=1), 1.0, atol=1e-4))
    assert bool(jnp.allclose(logp, ref_logp, atol=1e-4, rtol=1e-4))
    assert bool(jnp.allclose(hidden[0], ref_hidden[0], atol=1e-4, rtol=1e-4))
    assert bool(jnp.allclose(hidden[1], ref_hidden[1], atol=1e-4, rtol=1e-4))

    print("KERNEL_OK")
</pallas_src>

<mosaic_0001>
module attributes {stable_mosaic.version = 11 : i64} {
  func.func @lstm_net_seq_kernel(%arg0: memref<8x32xf32, #tpu.memory_space<vmem>>, %arg1: memref<8x128xf32, #tpu.memory_space<vmem>>, %arg2: memref<296x128xf32, #tpu.memory_space<vmem>>, %arg3: memref<8x128xf32, #tpu.memory_space<vmem>>) attributes {dimension_semantics = [], scalar_prefetch = 0 : i64, scratch_operands = 0 : i64, tpu.core_type = #tpu.core_type<tc>} {
    %c0 = arith.constant 0 : index
    %c0_0 = arith.constant 0 : index
    %0 = vector.load %arg2[%c0, %c0_0] : memref<296x128xf32, #tpu.memory_space<vmem>>, vector<64x128xf32>
    %c64 = arith.constant 64 : index
    %c0_1 = arith.constant 0 : index
    %1 = vector.load %arg2[%c64, %c0_1] : memref<296x128xf32, #tpu.memory_space<vmem>>, vector<64x128xf32>
    %c128 = arith.constant 128 : index
    %c0_2 = arith.constant 0 : index
    %2 = vector.load %arg2[%c128, %c0_2] : memref<296x128xf32, #tpu.memory_space<vmem>>, vector<32x128xf32>
    %c160 = arith.constant 160 : index
    %c0_3 = arith.constant 0 : index
    %3 = vector.load %arg2[%c160, %c0_3] : memref<296x128xf32, #tpu.memory_space<vmem>>, vector<128x128xf32>
    %c288 = arith.constant 288 : index
    %c0_4 = arith.constant 0 : index
    %4 = vector.load %arg2[%c288, %c0_4] : memref<296x128xf32, #tpu.memory_space<vmem>>, vector<1x128xf32>
    %c289 = arith.constant 289 : index
    %c0_5 = arith.constant 0 : index
    %5 = vector.load %arg2[%c289, %c0_5] : memref<296x128xf32, #tpu.memory_space<vmem>>, vector<1x128xf32>
    %c290 = arith.constant 290 : index
    %c0_6 = arith.constant 0 : index
    %6 = vector.load %arg2[%c290, %c0_6] : memref<296x128xf32, #tpu.memory_space<vmem>>, vector<1x128xf32>
    %c291 = arith.constant 291 : index
    %c0_7 = arith.constant 0 : index
    %7 = vector.load %arg2[%c291, %c0_7] : memref<296x128xf32, #tpu.memory_space<vmem>>, vector<1x128xf32>
    %c0_8 = arith.constant 0 : index
    %c0_9 = arith.constant 0 : index
    %8 = vector.load %arg1[%c0_8, %c0_9] : memref<8x128xf32, #tpu.memory_space<vmem>>, vector<1x32xf32>
    %c1 = arith.constant 1 : index
    %c0_10 = arith.constant 0 : index
    %9 = vector.load %arg1[%c1, %c0_10] : memref<8x128xf32, #tpu.memory_space<vmem>>, vector<1x32xf32>
    %c2 = arith.constant 2 : index
    %c0_11 = arith.constant 0 : index
    %10 = vector.load %arg1[%c2, %c0_11] : memref<8x128xf32, #tpu.memory_space<vmem>>, vector<1x32xf32>
    %c3 = arith.constant 3 : index
    %c0_12 = arith.constant 0 : index
    %11 = vector.load %arg1[%c3, %c0_12] : memref<8x128xf32, #tpu.memory_space<vmem>>, vector<1x32xf32>
    %c0_i32 = arith.constant 0 : i32
    %12 = arith.index_cast %c0_i32 : i32 to index
    %c0_13 = arith.constant 0 : index
    %13 = vector.load %arg0[%12, %c0_13] : memref<8x32xf32, #tpu.memory_space<vmem>>, vector<1x32xf32>
    %14 = tpu.concatenate %13, %8 in 1 : vector<1x32xf32>, vector<1x32xf32> -> vector<1x64xf32>
    %cst = arith.constant dense<0.000000e+00> : vector<1x128xf32>
    %15 = tpu.matmul %14, %0, %cst {dimension_numbers = #tpu.dot_dimension_numbers<[1], [0], [0], [1], [0, 0, 1, 1], [], []>} : vector<1x64xf32>, vector<64x128xf32>, vector<1x128xf32> -> vector<1x128xf32>
    %16 = arith.addf %15, %4 : vector<1x128xf32>
    %17 = vector.extract_strided_slice %16 {offsets = [0, 0], sizes = [1, 96], strides = [1, 1]} : vector<1x128xf32> to vector<1x96xf32>
    %18 = arith.negf %17 : vector<1x96xf32>
    %19 = math.exp %18 : vector<1x96xf32>
    %cst_14 = arith.constant 1.000000e+00 : f32
    %20 = vector.broadcast %cst_14 : f32 to vector<1x96xf32>
    %21 = arith.addf %20, %19 : vector<1x96xf32>
    %22 = arith.divf %20, %21 : vector<1x96xf32>
    %23 = vector.extract_strided_slice %16 {offsets = [0, 96], sizes = [1, 32], strides = [1, 1]} : vector<1x128xf32> to vector<1x32xf32>
    %24 = math.tanh %23 : vector<1x32xf32>
    %25 = vector.extract_strided_slice %22 {offsets = [0, 0], sizes = [1, 32], strides = [1, 1]} : vector<1x96xf32> to vector<1x32xf32>
    %26 = vector.extract_strided_slice %22 {offsets = [0, 32], sizes = [1, 32], strides = [1, 1]} : vector<1x96xf32> to vector<1x32xf32>
    %27 = vector.extract_strided_slice %22 {offsets = [0, 64], sizes = [1, 32], strides = [1, 1]} : vector<1x96xf32> to vector<1x32xf32>
    %28 = arith.mulf %26, %9 : vector<1x32xf32>
    %29 = arith.mulf %25, %24 : vector<1x32xf32>
    %30 = arith.addf %28, %29 : vector<1x32xf32>
    %31 = math.tanh %30 : vector<1x32xf32>
    %32 = arith.mulf %27, %31 : vector<1x32xf32>
    %33 = tpu.concatenate %32, %10 in 1 : vector<1x32xf32>, vector<1x32xf32> -> vector<1x64xf32>
    %cst_15 = arith.constant dense<0.000000e+00> : vector<1x128xf32>
    %34 = tpu.matmul %33, %1, %cst_15 {dimension_numbers = #tpu.dot_dimension_numbers<[1], [0], [0], [1], [0, 0, 1, 1], [], []>} : vector<1x64xf32>, vector<64x128xf32>, vector<1x128xf32> -> vector<1x128xf32>
    %35 = arith.addf %34, %5 : vector<1x128xf32>
    %36 = vector.extract_strided_slice %35 {offsets = [0, 0], sizes = [1, 96], strides = [1, 1]} : vector<1x128xf32> to vector<1x96xf32>
    %37 = arith.negf %36 : vector<1x96xf32>
    %38 = math.exp %37 : vector<1x96xf32>
    %cst_16 = arith.constant 1.000000e+00 : f32
    %39 = vector.broadcast %cst_16 : f32 to vector<1x96xf32>
    %40 = arith.addf %39, %38 : vector<1x96xf32>
    %41 = arith.divf %39, %40 : vector<1x96xf32>
    %42 = vector.extract_strided_slice %35 {offsets = [0, 96], sizes = [1, 32], strides = [1, 1]} : vector<1x128xf32> to vector<1x32xf32>
    %43 = math.tanh %42 : vector<1x32xf32>
    %44 = vector.extract_strided_slice %41 {offsets = [0, 0], sizes = [1, 32], strides = [1, 1]} : vector<1x96xf32> to vector<1x32xf32>
    %45 = vector.extract_strided_slice %41 {offsets = [0, 32], sizes = [1, 32], strides = [1, 1]} : vector<1x96xf32> to vector<1x32xf32>
    %46 = vector.extract_strided_slice %41 {offsets = [0, 64], sizes = [1, 32], strides = [1, 1]} : vector<1x96xf32> to vector<1x32xf32>
    %47 = arith.mulf %45, %11 : vector<1x32xf32>
    %48 = arith.mulf %44, %43 : vector<1x32xf32>
    %49 = arith.addf %47, %48 : vector<1x32xf32>
    %50 = math.tanh %49 : vector<1x32xf32>
    %51 = arith.mulf %46, %50 : vector<1x32xf32>
    %c1_i32 = arith.constant 1 : i32
    %52 = arith.index_cast %c1_i32 : i32 to index
    %c0_17 = arith.constant 0 : index
    %53 = vector.load %arg0[%52, %c0_17] : memref<8x32xf32, #tpu.memory_space<vmem>>, vector<1x32xf32>
    %54 = tpu.concatenate %53, %32 in 1 : vector<1x32xf32>, vector<1x32xf32> -> vector<1x64xf32>
    %cst_18 = arith.constant dense<0.000000e+00> : vector<1x128xf32>
    %55 = tpu.matmul %54, %0, %cst_18 {dimension_numbers = #tpu.dot_dimension_numbers<[1], [0], [0], [1], [0, 0, 1, 1], [], []>} : vector<1x64xf32>, vector<64x128xf32>, vector<1x128xf32> -> vector<1x128xf32>
    %56 = arith.addf %55, %4 : vector<1x128xf32>
    %57 = vector.extract_strided_slice %56 {offsets = [0, 0], sizes = [1, 96], strides = [1, 1]} : vector<1x128xf32> to vector<1x96xf32>
    %58 = arith.negf %57 : vector<1x96xf32>
    %59 = math.exp %58 : vector<1x96xf32>
    %cst_19 = arith.constant 1.000000e+00 : f32
    %60 = vector.broadcast %cst_19 : f32 to vector<1x96xf32>
    %61 = arith.addf %60, %59 : vector<1x96xf32>
    %62 = arith.divf %60, %61 : vector<1x96xf32>
    %63 = vector.extract_strided_slice %56 {offsets = [0, 96], sizes = [1, 32], strides = [1, 1]} : vector<1x128xf32> to vector<1x32xf32>
    %64 = math.tanh %63 : vector<1x32xf32>
    %65 = vector.extract_strided_slice %62 {offsets = [0, 0], sizes = [1, 32], strides = [1, 1]} : vector<1x96xf32> to vector<1x32xf32>
    %66 = vector.extract_strided_slice %62 {offsets = [0, 32], sizes = [1, 32], strides = [1, 1]} : vector<1x96xf32> to vector<1x32xf32>
    %67 = vector.extract_strided_slice %62 {offsets = [0, 64], sizes = [1, 32], strides = [1, 1]} : vector<1x96xf32> to vector<1x32xf32>
    %68 = arith.mulf %66, %30 : vector<1x32xf32>
    %69 = arith.mulf %65, %64 : vector<1x32xf32>
    %70 = arith.addf %68, %69 : vector<1x32xf32>
    %71 = math.tanh %70 : vector<1x32xf32>
    %72 = arith.mulf %67, %71 : vector<1x32xf32>
    %73 = tpu.concatenate %72, %51 in 1 : vector<1x32xf32>, vector<1x32xf32> -> vector<1x64xf32>
    %cst_20 = arith.constant dense<0.000000e+00> : vector<1x128xf32>
    %74 = tpu.matmul %73, %1, %cst_20 {dimension_numbers = #tpu.dot_dimension_numbers<[1], [0], [0], [1], [0, 0, 1, 1], [], []>} : vector<1x64xf32>, vector<64x128xf32>, vector<1x128xf32> -> vector<1x128xf32>
    %75 = arith.addf %74, %5 : vector<1x128xf32>
    %76 = vector.extract_strided_slice %75 {offsets = [0, 0], sizes = [1, 96], strides = [1, 1]} : vector<1x128xf32> to vector<1x96xf32>
    %77 = arith.negf %76 : vector<1x96xf32>
    %78 = math.exp %77 : vector<1x96xf32>
    %cst_21 = arith.constant 1.000000e+00 : f32
    %79 = vector.broadcast %cst_21 : f32 to vector<1x96xf32>
    %80 = arith.addf %79, %78 : vector<1x96xf32>
    %81 = arith.divf %79, %80 : vector<1x96xf32>
    %82 = vector.extract_strided_slice %75 {offsets = [0, 96], sizes = [1, 32], strides = [1, 1]} : vector<1x128xf32> to vector<1x32xf32>
    %83 = math.tanh %82 : vector<1x32xf32>
    %84 = vector.extract_strided_slice %81 {offsets = [0, 0], sizes = [1, 32], strides = [1, 1]} : vector<1x96xf32> to vector<1x32xf32>
    %85 = vector.extract_strided_slice %81 {offsets = [0, 32], sizes = [1, 32], strides = [1, 1]} : vector<1x96xf32> to vector<1x32xf32>
    %86 = vector.extract_strided_slice %81 {offsets = [0, 64], sizes = [1, 32], strides = [1, 1]} : vector<1x96xf32> to vector<1x32xf32>
    %87 = arith.mulf %85, %49 : vector<1x32xf32>
    %88 = arith.mulf %84, %83 : vector<1x32xf32>
    %89 = arith.addf %87, %88 : vector<1x32xf32>
    %90 = math.tanh %89 : vector<1x32xf32>
    %91 = arith.mulf %86, %90 : vector<1x32xf32>
    %c2_i32 = arith.constant 2 : i32
    %92 = arith.index_cast %c2_i32 : i32 to index
    %c0_22 = arith.constant 0 : index
    %93 = vector.load %arg0[%92, %c0_22] : memref<8x32xf32, #tpu.memory_space<vmem>>, vector<1x32xf32>
    %94 = tpu.concatenate %93, %72 in 1 : vector<1x32xf32>, vector<1x32xf32> -> vector<1x64xf32>
    %cst_23 = arith.constant dense<0.000000e+00> : vector<1x128xf32>
    %95 = tpu.matmul %94, %0, %cst_23 {dimension_numbers = #tpu.dot_dimension_numbers<[1], [0], [0], [1], [0, 0, 1, 1], [], []>} : vector<1x64xf32>, vector<64x128xf32>, vector<1x128xf32> -> vector<1x128xf32>
    %96 = arith.addf %95, %4 : vector<1x128xf32>
    %97 = vector.extract_strided_slice %96 {offsets = [0, 0], sizes = [1, 96], strides = [1, 1]} : vector<1x128xf32> to vector<1x96xf32>
    %98 = arith.negf %97 : vector<1x96xf32>
    %99 = math.exp %98 : vector<1x96xf32>
    %cst_24 = arith.constant 1.000000e+00 : f32
    %100 = vector.broadcast %cst_24 : f32 to vector<1x96xf32>
    %101 = arith.addf %100, %99 : vector<1x96xf32>
    %102 = arith.divf %100, %101 : vector<1x96xf32>
    %103 = vector.extract_strided_slice %96 {offsets = [0, 96], sizes = [1, 32], strides = [1, 1]} : vector<1x128xf32> to vector<1x32xf32>
    %104 = math.tanh %103 : vector<1x32xf32>
    %105 = vector.extract_strided_slice %102 {offsets = [0, 0], sizes = [1, 32], strides = [1, 1]} : vector<1x96xf32> to vector<1x32xf32>
    %106 = vector.extract_strided_slice %102 {offsets = [0, 32], sizes = [1, 32], strides = [1, 1]} : vector<1x96xf32> to vector<1x32xf32>
    %107 = vector.extract_strided_slice %102 {offsets = [0, 64], sizes = [1, 32], strides = [1, 1]} : vector<1x96xf32> to vector<1x32xf32>
    %108 = arith.mulf %106, %70 : vector<1x32xf32>
    %109 = arith.mulf %105, %104 : vector<1x32xf32>
    %110 = arith.addf %108, %109 : vector<1x32xf32>
    %111 = math.tanh %110 : vector<1x32xf32>
    %112 = arith.mulf %107, %111 : vector<1x32xf32>
    %113 = tpu.concatenate %112, %91 in 1 : vector<1x32xf32>, vector<1x32xf32> -> vector<1x64xf32>
    %cst_25 = arith.constant dense<0.000000e+00> : vector<1x128xf32>
    %114 = tpu.matmul %113, %1, %cst_25 {dimension_numbers = #tpu.dot_dimension_numbers<[1], [0], [0], [1], [0, 0, 1, 1], [], []>} : vector<1x64xf32>, vector<64x128xf32>, vector<1x128xf32> -> vector<1x128xf32>
    %115 = arith.addf %114, %5 : vector<1x128xf32>
    %116 = vector.extract_strided_slice %115 {offsets = [0, 0], sizes = [1, 96], strides = [1, 1]} : vector<1x128xf32> to vector<1x96xf32>
    %117 = arith.negf %116 : vector<1x96xf32>
    %118 = math.exp %117 : vector<1x96xf32>
    %cst_26 = arith.constant 1.000000e+00 : f32
    %119 = vector.broadcast %cst_26 : f32 to vector<1x96xf32>
    %120 = arith.addf %119, %118 : vector<1x96xf32>
    %121 = arith.divf %119, %120 : vector<1x96xf32>
    %122 = vector.extract_strided_slice %115 {offsets = [0, 96], sizes = [1, 32], strides = [1, 1]} : vector<1x128xf32> to vector<1x32xf32>
    %123 = math.tanh %122 : vector<1x32xf32>
    %124 = vector.extract_strided_slice %121 {offsets = [0, 0], sizes = [1, 32], strides = [1, 1]} : vector<1x96xf32> to vector<1x32xf32>
    %125 = vector.extract_strided_slice %121 {offsets = [0, 32], sizes = [1, 32], strides = [1, 1]} : vector<1x96xf32> to vector<1x32xf32>
    %126 = vector.extract_strided_slice %121 {offsets = [0, 64], sizes = [1, 32], strides = [1, 1]} : vector<1x96xf32> to vector<1x32xf32>
    %127 = arith.mulf %125, %89 : vector<1x32xf32>
    %128 = arith.mulf %124, %123 : vector<1x32xf32>
    %129 = arith.addf %127, %128 : vector<1x32xf32>
    %130 = math.tanh %129 : vector<1x32xf32>
    %131 = arith.mulf %126, %130 : vector<1x32xf32>
    %c3_i32 = arith.constant 3 : i32
    %132 = arith.index_cast %c3_i32 : i32 to index
    %c0_27 = arith.constant 0 : index
    %133 = vector.load %arg0[%132, %c0_27] : memref<8x32xf32, #tpu.memory_space<vmem>>, vector<1x32xf32>
    %134 = tpu.concatenate %133, %112 in 1 : vector<1x32xf32>, vector<1x32xf32> -> vector<1x64xf32>
    %cst_28 = arith.constant dense<0.000000e+00> : vector<1x128xf32>
    %135 = tpu.matmul %134, %0, %cst_28 {dimension_numbers = #tpu.dot_dimension_numbers<[1], [0], [0], [1], [0, 0, 1, 1], [], []>} : vector<1x64xf32>, vector<64x128xf32>, vector<1x128xf32> -> vector<1x128xf32>
    %136 = arith.addf %135, %4 : vector<1x128xf32>
    %137 = vector.extract_strided_slice %136 {offsets = [0, 0], sizes = [1, 96], strides = [1, 1]} : vector<1x128xf32> to vector<1x96xf32>
    %138 = arith.negf %137 : vector<1x96xf32>
    %139 = math.exp %138 : vector<1x96xf32>
    %cst_29 = arith.constant 1.000000e+00 : f32
    %140 = vector.broadcast %cst_29 : f32 to vector<1x96xf32>
    %141 = arith.addf %140, %139 : vector<1x96xf32>
    %142 = arith.divf %140, %141 : vector<1x96xf32>
    %143 = vector.extract_strided_slice %136 {offsets = [0, 96], sizes = [1, 32], strides = [1, 1]} : vector<1x128xf32> to vector<1x32xf32>
    %144 = math.tanh %143 : vector<1x32xf32>
    %145 = vector.extract_strided_slice %142 {offsets = [0, 0], sizes = [1, 32], strides = [1, 1]} : vector<1x96xf32> to vector<1x32xf32>
    %146 = vector.extract_strided_slice %142 {offsets = [0, 32], sizes = [1, 32], strides = [1, 1]} : vector<1x96xf32> to vector<1x32xf32>
    %147 = vector.extract_strided_slice %142 {offsets = [0, 64], sizes = [1, 32], strides = [1, 1]} : vector<1x96xf32> to vector<1x32xf32>
    %148 = arith.mulf %146, %110 : vector<1x32xf32>
    %149 = arith.mulf %145, %144 : vector<1x32xf32>
    %150 = arith.addf %148, %149 : vector<1x32xf32>
    %151 = math.tanh %150 : vector<1x32xf32>
    %152 = arith.mulf %147, %151 : vector<1x32xf32>
    %153 = tpu.concatenate %152, %131 in 1 : vector<1x32xf32>, vector<1x32xf32> -> vector<1x64xf32>
    %cst_30 = arith.constant dense<0.000000e+00> : vector<1x128xf32>
    %154 = tpu.matmul %153, %1, %cst_30 {dimension_numbers = #tpu.dot_dimension_numbers<[1], [0], [0], [1], [0, 0, 1, 1], [], []>} : vector<1x64xf32>, vector<64x128xf32>, vector<1x128xf32> -> vector<1x128xf32>
    %155 = arith.addf %154, %5 : vector<1x128xf32>
    %156 = vector.extract_strided_slice %155 {offsets = [0, 0], sizes = [1, 96], strides = [1, 1]} : vector<1x128xf32> to vector<1x96xf32>
    %157 = arith.negf %156 : vector<1x96xf32>
    %158 = math.exp %157 : vector<1x96xf32>
    %cst_31 = arith.constant 1.000000e+00 : f32
    %159 = vector.broadcast %cst_31 : f32 to vector<1x96xf32>
    %160 = arith.addf %159, %158 : vector<1x96xf32>
    %161 = arith.divf %159, %160 : vector<1x96xf32>
    %162 = vector.extract_strided_slice %155 {offsets = [0, 96], sizes = [1, 32], strides = [1, 1]} : vector<1x128xf32> to vector<1x32xf32>
    %163 = math.tanh %162 : vector<1x32xf32>
    %164 = vector.extract_strided_slice %161 {offsets = [0, 0], sizes = [1, 32], strides = [1, 1]} : vector<1x96xf32> to vector<1x32xf32>
    %165 = vector.extract_strided_slice %161 {offsets = [0, 32], sizes = [1, 32], strides = [1, 1]} : vector<1x96xf32> to vector<1x32xf32>
    %166 = vector.extract_strided_slice %161 {offsets = [0, 64], sizes = [1, 32], strides = [1, 1]} : vector<1x96xf32> to vector<1x32xf32>
    %167 = arith.mulf %165, %129 : vector<1x32xf32>
    %168 = arith.mulf %164, %163 : vector<1x32xf32>
    %169 = arith.addf %167, %168 : vector<1x32xf32>
    %170 = math.tanh %169 : vector<1x32xf32>
    %171 = arith.mulf %166, %170 : vector<1x32xf32>
    %c4_i32 = arith.constant 4 : i32
    %172 = arith.index_cast %c4_i32 : i32 to index
    %c0_32 = arith.constant 0 : index
    %173 = vector.load %arg0[%172, %c0_32] : memref<8x32xf32, #tpu.memory_space<vmem>>, vector<1x32xf32>
    %174 = tpu.concatenate %173, %152 in 1 : vector<1x32xf32>, vector<1x32xf32> -> vector<1x64xf32>
    %cst_33 = arith.constant dense<0.000000e+00> : vector<1x128xf32>
    %175 = tpu.matmul %174, %0, %cst_33 {dimension_numbers = #tpu.dot_dimension_numbers<[1], [0], [0], [1], [0, 0, 1, 1], [], []>} : vector<1x64xf32>, vector<64x128xf32>, vector<1x128xf32> -> vector<1x128xf32>
    %176 = arith.addf %175, %4 : vector<1x128xf32>
    %177 = vector.extract_strided_slice %176 {offsets = [0, 0], sizes = [1, 96], strides = [1, 1]} : vector<1x128xf32> to vector<1x96xf32>
    %178 = arith.negf %177 : vector<1x96xf32>
    %179 = math.exp %178 : vector<1x96xf32>
    %cst_34 = arith.constant 1.000000e+00 : f32
    %180 = vector.broadcast %cst_34 : f32 to vector<1x96xf32>
    %181 = arith.addf %180, %179 : vector<1x96xf32>
    %182 = arith.divf %180, %181 : vector<1x96xf32>
    %183 = vector.extract_strided_slice %176 {offsets = [0, 96], sizes = [1, 32], strides = [1, 1]} : vector<1x128xf32> to vector<1x32xf32>
    %184 = math.tanh %183 : vector<1x32xf32>
    %185 = vector.extract_strided_slice %182 {offsets = [0, 0], sizes = [1, 32], strides = [1, 1]} : vector<1x96xf32> to vector<1x32xf32>
    %186 = vector.extract_strided_slice %182 {offsets = [0, 32], sizes = [1, 32], strides = [1, 1]} : vector<1x96xf32> to vector<1x32xf32>
    %187 = vector.extract_strided_slice %182 {offsets = [0, 64], sizes = [1, 32], strides = [1, 1]} : vector<1x96xf32> to vector<1x32xf32>
    %188 = arith.mulf %186, %150 : vector<1x32xf32>
    %189 = arith.mulf %185, %184 : vector<1x32xf32>
    %190 = arith.addf %188, %189 : vector<1x32xf32>
    %191 = math.tanh %190 : vector<1x32xf32>
    %192 = arith.mulf %187, %191 : vector<1x32xf32>
    %193 = tpu.concatenate %192, %171 in 1 : vector<1x32xf32>, vector<1x32xf32> -> vector<1x64xf32>
    %cst_35 = arith.constant dense<0.000000e+00> : vector<1x128xf32>
    %194 = tpu.matmul %193, %1, %cst_35 {dimension_numbers = #tpu.dot_dimension_numbers<[1], [0], [0], [1], [0, 0, 1, 1], [], []>} : vector<1x64xf32>, vector<64x128xf32>, vector<1x128xf32> -> vector<1x128xf32>
    %195 = arith.addf %194, %5 : vector<1x128xf32>
    %196 = vector.extract_strided_slice %195 {offsets = [0, 0], sizes = [1, 96], strides = [1, 1]} : vector<1x128xf32> to vector<1x96xf32>
    %197 = arith.negf %196 : vector<1x96xf32>
    %198 = math.exp %197 : vector<1x96xf32>
    %cst_36 = arith.constant 1.000000e+00 : f32
    %199 = vector.broadcast %cst_36 : f32 to vector<1x96xf32>
    %200 = arith.addf %199, %198 : vector<1x96xf32>
    %201 = arith.divf %199, %200 : vector<1x96xf32>
    %202 = vector.extract_strided_slice %195 {offsets = [0, 96], sizes = [1, 32], strides = [1, 1]} : vector<1x128xf32> to vector<1x32xf32>
    %203 = math.tanh %202 : vector<1x32xf32>
    %204 = vector.extract_strided_slice %201 {offsets = [0, 0], sizes = [1, 32], strides = [1, 1]} : vector<1x96xf32> to vector<1x32xf32>
    %205 = vector.extract_strided_slice %201 {offsets = [0, 32], sizes = [1, 32], strides = [1, 1]} : vector<1x96xf32> to vector<1x32xf32>
    %206 = vector.extract_strided_slice %201 {offsets = [0, 64], sizes = [1, 32], strides = [1, 1]} : vector<1x96xf32> to vector<1x32xf32>
    %207 = arith.mulf %205, %169 : vector<1x32xf32>
    %208 = arith.mulf %204, %203 : vector<1x32xf32>
    %209 = arith.addf %207, %208 : vector<1x32xf32>
    %210 = math.tanh %209 : vector<1x32xf32>
    %211 = arith.mulf %206, %210 : vector<1x32xf32>
    %c5_i32 = arith.constant 5 : i32
    %212 = arith.index_cast %c5_i32 : i32 to index
    %c0_37 = arith.constant 0 : index
    %213 = vector.load %arg0[%212, %c0_37] : memref<8x32xf32, #tpu.memory_space<vmem>>, vector<1x32xf32>
    %214 = tpu.concatenate %213, %192 in 1 : vector<1x32xf32>, vector<1x32xf32> -> vector<1x64xf32>
    %cst_38 = arith.constant dense<0.000000e+00> : vector<1x128xf32>
    %215 = tpu.matmul %214, %0, %cst_38 {dimension_numbers = #tpu.dot_dimension_numbers<[1], [0], [0], [1], [0, 0, 1, 1], [], []>} : vector<1x64xf32>, vector<64x128xf32>, vector<1x128xf32> -> vector<1x128xf32>
    %216 = arith.addf %215, %4 : vector<1x128xf32>
    %217 = vector.extract_strided_slice %216 {offsets = [0, 0], sizes = [1, 96], strides = [1, 1]} : vector<1x128xf32> to vector<1x96xf32>
    %218 = arith.negf %217 : vector<1x96xf32>
    %219 = math.exp %218 : vector<1x96xf32>
    %cst_39 = arith.constant 1.000000e+00 : f32
    %220 = vector.broadcast %cst_39 : f32 to vector<1x96xf32>
    %221 = arith.addf %220, %219 : vector<1x96xf32>
    %222 = arith.divf %220, %221 : vector<1x96xf32>
    %223 = vector.extract_strided_slice %216 {offsets = [0, 96], sizes = [1, 32], strides = [1, 1]} : vector<1x128xf32> to vector<1x32xf32>
    %224 = math.tanh %223 : vector<1x32xf32>
    %225 = vector.extract_strided_slice %222 {offsets = [0, 0], sizes = [1, 32], strides = [1, 1]} : vector<1x96xf32> to vector<1x32xf32>
    %226 = vector.extract_strided_slice %222 {offsets = [0, 32], sizes = [1, 32], strides = [1, 1]} : vector<1x96xf32> to vector<1x32xf32>
    %227 = vector.extract_strided_slice %222 {offsets = [0, 64], sizes = [1, 32], strides = [1, 1]} : vector<1x96xf32> to vector<1x32xf32>
    %228 = arith.mulf %226, %190 : vector<1x32xf32>
    %229 = arith.mulf %225, %224 : vector<1x32xf32>
    %230 = arith.addf %228, %229 : vector<1x32xf32>
    %231 = math.tanh %230 : vector<1x32xf32>
    %232 = arith.mulf %227, %231 : vector<1x32xf32>
    %233 = tpu.concatenate %232, %211 in 1 : vector<1x32xf32>, vector<1x32xf32> -> vector<1x64xf32>
    %cst_40 = arith.constant dense<0.000000e+00> : vector<1x128xf32>
    %234 = tpu.matmul %233, %1, %cst_40 {dimension_numbers = #tpu.dot_dimension_numbers<[1], [0], [0], [1], [0, 0, 1, 1], [], []>} : vector<1x64xf32>, vector<64x128xf32>, vector<1x128xf32> -> vector<1x128xf32>
    %235 = arith.addf %234, %5 : vector<1x128xf32>
    %236 = vector.extract_strided_slice %235 {offsets = [0, 0], sizes = [1, 96], strides = [1, 1]} : vector<1x128xf32> to vector<1x96xf32>
    %237 = arith.negf %236 : vector<1x96xf32>
    %238 = math.exp %237 : vector<1x96xf32>
    %cst_41 = arith.constant 1.000000e+00 : f32
    %239 = vector.broadcast %cst_41 : f32 to vector<1x96xf32>
    %240 = arith.addf %239, %238 : vector<1x96xf32>
    %241 = arith.divf %239, %240 : vector<1x96xf32>
    %242 = vector.extract_strided_slice %235 {offsets = [0, 96], sizes = [1, 32], strides = [1, 1]} : vector<1x128xf32> to vector<1x32xf32>
    %243 = math.tanh %242 : vector<1x32xf32>
    %244 = vector.extract_strided_slice %241 {offsets = [0, 0], sizes = [1, 32], strides = [1, 1]} : vector<1x96xf32> to vector<1x32xf32>
    %245 = vector.extract_strided_slice %241 {offsets = [0, 32], sizes = [1, 32], strides = [1, 1]} : vector<1x96xf32> to vector<1x32xf32>
    %246 = vector.extract_strided_slice %241 {offsets = [0, 64], sizes = [1, 32], strides = [1, 1]} : vector<1x96xf32> to vector<1x32xf32>
    %247 = arith.mulf %245, %209 : vector<1x32xf32>
    %248 = arith.mulf %244, %243 : vector<1x32xf32>
    %249 = arith.addf %247, %248 : vector<1x32xf32>
    %250 = math.tanh %249 : vector<1x32xf32>
    %251 = arith.mulf %246, %250 : vector<1x32xf32>
    %c6_i32 = arith.constant 6 : i32
    %252 = arith.index_cast %c6_i32 : i32 to index
    %c0_42 = arith.constant 0 : index
    %253 = vector.load %arg0[%252, %c0_42] : memref<8x32xf32, #tpu.memory_space<vmem>>, vector<1x32xf32>
    %254 = tpu.concatenate %253, %232 in 1 : vector<1x32xf32>, vector<1x32xf32> -> vector<1x64xf32>
    %cst_43 = arith.constant dense<0.000000e+00> : vector<1x128xf32>
    %255 = tpu.matmul %254, %0, %cst_43 {dimension_numbers = #tpu.dot_dimension_numbers<[1], [0], [0], [1], [0, 0, 1, 1], [], []>} : vector<1x64xf32>, vector<64x128xf32>, vector<1x128xf32> -> vector<1x128xf32>
    %256 = arith.addf %255, %4 : vector<1x128xf32>
    %257 = vector.extract_strided_slice %256 {offsets = [0, 0], sizes = [1, 96], strides = [1, 1]} : vector<1x128xf32> to vector<1x96xf32>
    %258 = arith.negf %257 : vector<1x96xf32>
    %259 = math.exp %258 : vector<1x96xf32>
    %cst_44 = arith.constant 1.000000e+00 : f32
    %260 = vector.broadcast %cst_44 : f32 to vector<1x96xf32>
    %261 = arith.addf %260, %259 : vector<1x96xf32>
    %262 = arith.divf %260, %261 : vector<1x96xf32>
    %263 = vector.extract_strided_slice %256 {offsets = [0, 96], sizes = [1, 32], strides = [1, 1]} : vector<1x128xf32> to vector<1x32xf32>
    %264 = math.tanh %263 : vector<1x32xf32>
    %265 = vector.extract_strided_slice %262 {offsets = [0, 0], sizes = [1, 32], strides = [1, 1]} : vector<1x96xf32> to vector<1x32xf32>
    %266 = vector.extract_strided_slice %262 {offsets = [0, 32], sizes = [1, 32], strides = [1, 1]} : vector<1x96xf32> to vector<1x32xf32>
    %267 = vector.extract_strided_slice %262 {offsets = [0, 64], sizes = [1, 32], strides = [1, 1]} : vector<1x96xf32> to vector<1x32xf32>
    %268 = arith.mulf %266, %230 : vector<1x32xf32>
    %269 = arith.mulf %265, %264 : vector<1x32xf32>
    %270 = arith.addf %268, %269 : vector<1x32xf32>
    %271 = math.tanh %270 : vector<1x32xf32>
    %272 = arith.mulf %267, %271 : vector<1x32xf32>
    %273 = tpu.concatenate %272, %251 in 1 : vector<1x32xf32>, vector<1x32xf32> -> vector<1x64xf32>
    %cst_45 = arith.constant dense<0.000000e+00> : vector<1x128xf32>
    %274 = tpu.matmul %273, %1, %cst_45 {dimension_numbers = #tpu.dot_dimension_numbers<[1], [0], [0], [1], [0, 0, 1, 1], [], []>} : vector<1x64xf32>, vector<64x128xf32>, vector<1x128xf32> -> vector<1x128xf32>
    %275 = arith.addf %274, %5 : vector<1x128xf32>
    %276 = vector.extract_strided_slice %275 {offsets = [0, 0], sizes = [1, 96], strides = [1, 1]} : vector<1x128xf32> to vector<1x96xf32>
    %277 = arith.negf %276 : vector<1x96xf32>
    %278 = math.exp %277 : vector<1x96xf32>
    %cst_46 = arith.constant 1.000000e+00 : f32
    %279 = vector.broadcast %cst_46 : f32 to vector<1x96xf32>
    %280 = arith.addf %279, %278 : vector<1x96xf32>
    %281 = arith.divf %279, %280 : vector<1x96xf32>
    %282 = vector.extract_strided_slice %275 {offsets = [0, 96], sizes = [1, 32], strides = [1, 1]} : vector<1x128xf32> to vector<1x32xf32>
    %283 = math.tanh %282 : vector<1x32xf32>
    %284 = vector.extract_strided_slice %281 {offsets = [0, 0], sizes = [1, 32], strides = [1, 1]} : vector<1x96xf32> to vector<1x32xf32>
    %285 = vector.extract_strided_slice %281 {offsets = [0, 32], sizes = [1, 32], strides = [1, 1]} : vector<1x96xf32> to vector<1x32xf32>
    %286 = vector.extract_strided_slice %281 {offsets = [0, 64], sizes = [1, 32], strides = [1, 1]} : vector<1x96xf32> to vector<1x32xf32>
    %287 = arith.mulf %285, %249 : vector<1x32xf32>
    %288 = arith.mulf %284, %283 : vector<1x32xf32>
    %289 = arith.addf %287, %288 : vector<1x32xf32>
    %290 = math.tanh %289 : vector<1x32xf32>
    %291 = arith.mulf %286, %290 : vector<1x32xf32>
    %c7_i32 = arith.constant 7 : i32
    %292 = arith.index_cast %c7_i32 : i32 to index
    %c0_47 = arith.constant 0 : index
    %293 = vector.load %arg0[%292, %c0_47] : memref<8x32xf32, #tpu.memory_space<vmem>>, vector<1x32xf32>
    %294 = tpu.concatenate %293, %272 in 1 : vector<1x32xf32>, vector<1x32xf32> -> vector<1x64xf32>
    %cst_48 = arith.constant dense<0.000000e+00> : vector<1x128xf32>
    %295 = tpu.matmul %294, %0, %cst_48 {dimension_numbers = #tpu.dot_dimension_numbers<[1], [0], [0], [1], [0, 0, 1, 1], [], []>} : vector<1x64xf32>, vector<64x128xf32>, vector<1x128xf32> -> vector<1x128xf32>
    %296 = arith.addf %295, %4 : vector<1x128xf32>
    %297 = vector.extract_strided_slice %296 {offsets = [0, 0], sizes = [1, 96], strides = [1, 1]} : vector<1x128xf32> to vector<1x96xf32>
    %298 = arith.negf %297 : vector<1x96xf32>
    %299 = math.exp %298 : vector<1x96xf32>
    %cst_49 = arith.constant 1.000000e+00 : f32
    %300 = vector.broadcast %cst_49 : f32 to vector<1x96xf32>
    %301 = arith.addf %300, %299 : vector<1x96xf32>
    %302 = arith.divf %300, %301 : vector<1x96xf32>
    %303 = vector.extract_strided_slice %296 {offsets = [0, 96], sizes = [1, 32], strides = [1, 1]} : vector<1x128xf32> to vector<1x32xf32>
    %304 = math.tanh %303 : vector<1x32xf32>
    %305 = vector.extract_strided_slice %302 {offsets = [0, 0], sizes = [1, 32], strides = [1, 1]} : vector<1x96xf32> to vector<1x32xf32>
    %306 = vector.extract_strided_slice %302 {offsets = [0, 32], sizes = [1, 32], strides = [1, 1]} : vector<1x96xf32> to vector<1x32xf32>
    %307 = vector.extract_strided_slice %302 {offsets = [0, 64], sizes = [1, 32], strides = [1, 1]} : vector<1x96xf32> to vector<1x32xf32>
    %308 = arith.mulf %306, %270 : vector<1x32xf32>
    %309 = arith.mulf %305, %304 : vector<1x32xf32>
    %310 = arith.addf %308, %309 : vector<1x32xf32>
    %311 = math.tanh %310 : vector<1x32xf32>
    %312 = arith.mulf %307, %311 : vector<1x32xf32>
    %313 = tpu.concatenate %312, %291 in 1 : vector<1x32xf32>, vector<1x32xf32> -> vector<1x64xf32>
    %cst_50 = arith.constant dense<0.000000e+00> : vector<1x128xf32>
    %314 = tpu.matmul %313, %1, %cst_50 {dimension_numbers = #tpu.dot_dimension_numbers<[1], [0], [0], [1], [0, 0, 1, 1], [], []>} : vector<1x64xf32>, vector<64x128xf32>, vector<1x128xf32> -> vector<1x128xf32>
    %315 = arith.addf %314, %5 : vector<1x128xf32>
    %316 = vector.extract_strided_slice %315 {offsets = [0, 0], sizes = [1, 96], strides = [1, 1]} : vector<1x128xf32> to vector<1x96xf32>
    %317 = arith.negf %316 : vector<1x96xf32>
    %318 = math.exp %317 : vector<1x96xf32>
    %cst_51 = arith.constant 1.000000e+00 : f32
    %319 = vector.broadcast %cst_51 : f32 to vector<1x96xf32>
    %320 = arith.addf %319, %318 : vector<1x96xf32>
    %321 = arith.divf %319, %320 : vector<1x96xf32>
    %322 = vector.extract_strided_slice %315 {offsets = [0, 96], sizes = [1, 32], strides = [1, 1]} : vector<1x128xf32> to vector<1x32xf32>
    %323 = math.tanh %322 : vector<1x32xf32>
    %324 = vector.extract_strided_slice %321 {offsets = [0, 0], sizes = [1, 32], strides = [1, 1]} : vector<1x96xf32> to vector<1x32xf32>
    %325 = vector.extract_strided_slice %321 {offsets = [0, 32], sizes = [1, 32], strides = [1, 1]} : vector<1x96xf32> to vector<1x32xf32>
    %326 = vector.extract_strided_slice %321 {offsets = [0, 64], sizes = [1, 32], strides = [1, 1]} : vector<1x96xf32> to vector<1x32xf32>
    %327 = arith.mulf %325, %289 : vector<1x32xf32>
    %328 = arith.mulf %324, %323 : vector<1x32xf32>
    %329 = arith.addf %327, %328 : vector<1x32xf32>
    %330 = math.tanh %329 : vector<1x32xf32>
    %331 = arith.mulf %326, %330 : vector<1x32xf32>
    %c8_i32 = arith.constant 8 : i32
    %cst_52 = arith.constant dense<0.000000e+00> : vector<1x128xf32>
    %332 = tpu.matmul %331, %2, %cst_52 {dimension_numbers = #tpu.dot_dimension_numbers<[1], [0], [0], [1], [0, 0, 1, 1], [], []>} : vector<1x32xf32>, vector<32x128xf32>, vector<1x128xf32> -> vector<1x128xf32>
    %333 = arith.addf %332, %6 : vector<1x128xf32>
    %cst_53 = arith.constant dense<0.000000e+00> : vector<1x128xf32>
    %334 = tpu.matmul %333, %3, %cst_53 {dimension_numbers = #tpu.dot_dimension_numbers<[1], [0], [0], [1], [0, 0, 1, 1], [], []>} : vector<1x128xf32>, vector<128x128xf32>, vector<1x128xf32> -> vector<1x128xf32>
    %335 = arith.addf %334, %7 : vector<1x128xf32>
    %336 = tpu.iota {dimensions = array<i32: 1>} : vector<1x128xi32>
    %c16_i32 = arith.constant 16 : i32
    %337 = vector.broadcast %c16_i32 : i32 to vector<1x128xi32>
    %338 = arith.cmpi slt, %336, %337 : vector<1x128xi32>
    %cst_54 = arith.constant 0xFF800000 : f32
    %339 = vector.broadcast %cst_54 : f32 to vector<1x128xf32>
    %340 = arith.select %338, %335, %339 : vector<1x128xi1>, vector<1x128xf32>
    %cst_55 = arith.constant dense<0xFF800000> : vector<1xf32>
    %341 = vector.multi_reduction <maximumf>, %340, %cst_55 [1] : vector<1x128xf32> to vector<1xf32>
    %342 = vector.shape_cast %341 : vector<1xf32> to vector<1x1xf32>
    %343 = vector.broadcast %342 : vector<1x1xf32> to vector<1x128xf32>
    %344 = arith.subf %335, %343 : vector<1x128xf32>
    %345 = math.exp %344 : vector<1x128xf32>
    %cst_56 = arith.constant 0.000000e+00 : f32
    %346 = vector.broadcast %cst_56 : f32 to vector<1x128xf32>
    %347 = arith.select %338, %345, %346 : vector<1x128xi1>, vector<1x128xf32>
    %cst_57 = arith.constant dense<0.000000e+00> : vector<1xf32>
    %348 = vector.multi_reduction <add>, %347, %cst_57 [1] : vector<1x128xf32> to vector<1xf32>
    %349 = vector.shape_cast %348 : vector<1xf32> to vector<1x1xf32>
    %350 = math.log %349 : vector<1x1xf32>
    %351 = vector.broadcast %350 : vector<1x1xf32> to vector<1x128xf32>
    %352 = arith.subf %344, %351 : vector<1x128xf32>
    %cst_58 = arith.constant 0.000000e+00 : f32
    %353 = vector.broadcast %cst_58 : f32 to vector<1x96xf32>
    %cst_59 = arith.constant 0.000000e+00 : f32
    %354 = vector.broadcast %cst_59 : f32 to vector<1x128xf32>
    %355 = arith.select %338, %352, %354 : vector<1x128xi1>, vector<1x128xf32>
    %c0_60 = arith.constant 0 : index
    %c0_61 = arith.constant 0 : index
    %356 = vector.load %arg3[%c0_60, %c0_61] : memref<8x128xf32, #tpu.memory_space<vmem>>, vector<1x128xf32>
    tpu.vector_store %arg3[%c0_60, %c0_61], %355 {strides = array<i32>} : memref<8x128xf32, #tpu.memory_space<vmem>>, vector<1x128xf32>,
    %357 = tpu.concatenate %312, %353 in 1 : vector<1x32xf32>, vector<1x96xf32> -> vector<1x128xf32>
    %c1_62 = arith.constant 1 : index
    %c0_63 = arith.constant 0 : index
    %358 = vector.load %arg3[%c1_62, %c0_63] : memref<8x128xf32, #tpu.memory_space<vmem>>, vector<1x128xf32>
    tpu.vector_store %arg3[%c1_62, %c0_63], %357 {strides = array<i32>} : memref<8x128xf32, #tpu.memory_space<vmem>>, vector<1x128xf32>,
    %359 = tpu.concatenate %310, %353 in 1 : vector<1x32xf32>, vector<1x96xf32> -> vector<1x128xf32>
    %c2_64 = arith.constant 2 : index
    %c0_65 = arith.constant 0 : index
    %360 = vector.load %arg3[%c2_64, %c0_65] : memref<8x128xf32, #tpu.memory_space<vmem>>, vector<1x128xf32>
    tpu.vector_store %arg3[%c2_64, %c0_65], %359 {strides = array<i32>} : memref<8x128xf32, #tpu.memory_space<vmem>>, vector<1x128xf32>,
    %361 = tpu.concatenate %331, %353 in 1 : vector<1x32xf32>, vector<1x96xf32> -> vector<1x128xf32>
    %c3_66 = arith.constant 3 : index
    %c0_67 = arith.constant 0 : index
    %362 = vector.load %arg3[%c3_66, %c0_67] : memref<8x128xf32, #tpu.memory_space<vmem>>, vector<1x128xf32>
    tpu.vector_store %arg3[%c3_66, %c0_67], %361 {strides = array<i32>} : memref<8x128xf32, #tpu.memory_space<vmem>>, vector<1x128xf32>,
    %363 = tpu.concatenate %329, %353 in 1 : vector<1x32xf32>, vector<1x96xf32> -> vector<1x128xf32>
    %c4 = arith.constant 4 : index
    %c0_68 = arith.constant 0 : index
    %364 = vector.load %arg3[%c4, %c0_68] : memref<8x128xf32, #tpu.memory_space<vmem>>, vector<1x128xf32>
    tpu.vector_store %arg3[%c4, %c0_68], %363 {strides = array<i32>} : memref<8x128xf32, #tpu.memory_space<vmem>>, vector<1x128xf32>,
    %cst_69 = arith.constant 0.000000e+00 : f32
    %365 = vector.broadcast %cst_69 : f32 to vector<3x128xf32>
    %c5 = arith.constant 5 : index
    %c0_70 = arith.constant 0 : index
    %366 = vector.load %arg3[%c5, %c0_70] : memref<8x128xf32, #tpu.memory_space<vmem>>, vector<3x128xf32>
    tpu.vector_store %arg3[%c5, %c0_70], %365 {strides = array<i32>} : memref<8x128xf32, #tpu.memory_space<vmem>>, vector<3x128xf32>,
    return
  }
}

</mosaic_0001>

<bundles_post_ra>
// kernel: lstm_net_forward_seq.1
= control target key start
LH: loop header
LB: loop body
LE: loop exit
PB: predicated region body
PF: predicated region fallthrough
CT: control target
= control target key end

     0   :  { %8 = vsyncpa [#allocation3], 0  ;;  %s1445_s15 = smov [#allocation2]   ;;  %s1446_s17 = smov 128   ;;  %s1882_s0 = inlined_call_operand.vmem [shape: f32[8,32], index: 0, kind: input, shape index: {}]   ;;  %s1883_s1 = inlined_call_operand.vmem [shape: f32[8,128], index: 1, kind: input, shape index: {}]   ;;  %s1884_s2 = inlined_call_operand.hbm [shape: f32[296,128], index: 2, kind: input, shape index: {}]   ;;  %s1885_s3 = inlined_call_operand.vmem [shape: f32[8,128], index: 3, kind: output, shape index: {}]  }
   0x1   :  { %s17_s14 = sshll.u32 %s1884_s2, 4  ;;  %s19_s16 = sshll.u32 %s1445_s15, 4  ;;  %s18_s14 = int_to_ptr.hbm [resolvable:$true] %s17_s14  ;;  %s20_s16 = int_to_ptr.vmem [resolvable:$true] %s19_s16 }
   0x2   :  { %s1447_s18 = smov 8  }
   0x3   :  { %25 = dma.hbm_to_vmem [thread:$0]  %s18_s14, 4736, %s20_s16, [#allocation3], %s1446_s17, %s1446_s17, %s1447_s18  }
   0x4   :  { %1443 = dma.done.wait [#allocation3], 4736  }
   0x5   :  { %1444 = vsyncadd [#allocation3], 4294962560  ;;  %v1448_v0 = vmov 0.0   ;;  %v70_v1 = vld [vmem:[%s1883_s1] sm:$0x1]  ;;  %v1481_v2 = vld [vmem:[#allocation2 + $0x38] sm:$0xff] }
   0x6   :  { %1239 = vst [vmem:[%s1885_s3 + $0x5] sm:$0x7] %v1448_v0  ;;  %v1483_v3 = vld [vmem:[#allocation2 + $0x30] sm:$0xff]  ;;  %s1449_s2 = smov 32   ;;  %93 = vmatpush.msra.mxu0 %v1481_v2  ;;  %v1487_v4 = vld [vmem:[#allocation2 + $0x28] sm:$0xff]  ;;  %v1490_v5 = vld [vmem:[#allocation2 + $0x20] sm:$0xff] }
   0x7   :  { %76 = vrot.lane.b32.xlu0 %v70_v1, %s1449_s2  ;;  %v1493_v6 = vld [vmem:[#allocation2 + $0x18] sm:$0xff]  ;;  %v1496_v7 = vld [vmem:[#allocation2 + $0x10] sm:$0xff]  ;;  %v1499_v8 = vld [vmem:[#allocation2 + $0x8] sm:$0xff]  ;;  %vm79_vm0 = vcmask 261120   ;;  %vm81_vm1 = vcmask 523264   ;;  %s1450_s29 = smov 96  }
   0x8   :  { %94 = vmatpush.msra.mxu0 %v1483_v3  ;;  %v1503_v9 = vld [vmem:[#allocation2] sm:$0xff]  ;;  %v1544_v39 = vld [vmem:[#allocation2 + $0x78] sm:$0xff]  ;;  %v1546_v40 = vld [vmem:[#allocation2 + $0x70] sm:$0xff]  ;;  %s1451_s30 = smov 64  }
   0x9   :  { %v71_v10 = vld [vmem:[%s1883_s1 + $0x1] sm:$0x1]  ;;  %v74_v11 = vld [vmem:[%s1882_s0] sm:$0x1]  ;;  %v72_v33 = vld [vmem:[%s1883_s1 + $0x2] sm:$0x1]  ;;  %166 = vmatpush.msra.mxu2 %v1544_v39  ;;  %304 = vmatpush.msra.mxu3 %v1544_v39 }
   0xa   :  { %95 = vmatpush.msra.mxu0 %v1487_v4  ;;  %126 = vrot.lane.b32.xlu1 %v71_v10, %s1449_s2  ;;  %v1531_v14 = vld [vmem:[#allocation2 + $0x120] sm:$0x1]  ;;  %v1550_v41 = vld [vmem:[#allocation2 + $0x68] sm:$0xff]  ;;  %v1560_v43 = vld [vmem:[#allocation2 + $0x58] sm:$0xff] }
   0xb   :  { %438 = vmatpush.msra.mxu1 %v1544_v39  ;;  %167 = vmatpush.msra.mxu2 %v1546_v40  ;;  %v1555_v42 = vld [vmem:[#allocation2 + $0x60] sm:$0xff]  ;;  %v1565_v44 = vld [vmem:[#allocation2 + $0x50] sm:$0xff]  ;;  %v1570_v45 = vld [vmem:[#allocation2 + $0x48] sm:$0xff] }
   0xc   :  { %96 = vmatpush.msra.mxu0 %v1490_v5  ;;  %305 = vmatpush.msra.mxu3 %v1546_v40  ;;  %v1581_v48 = vld [vmem:[#allocation2 + $0x40] sm:$0xff] }
   0xd   :  { %439 = vmatpush.msra.mxu1 %v1546_v40  ;;  %168 = vmatpush.msra.mxu2 %v1550_v41  ;;  %v73_v49 = vld [vmem:[%s1883_s1 + $0x3] sm:$0x1]  ;;  %v219_v53 = vld [vmem:[%s1882_s0 + $0x1] sm:$0x1] }
   0xe   :  { %97 = vmatpush.msra.mxu0 %v1493_v6  ;;  %306 = vmatpush.msra.mxu3 %v1550_v41  ;;  %v1637_v56 = vld [vmem:[#allocation2 + $0x121] sm:$0x1] }
   0xf   :  { %440 = vmatpush.msra.mxu1 %v1550_v41  ;;  %169 = vmatpush.msra.mxu2 %v1555_v42 }
  0x10   :  { %98 = vmatpush.msra.mxu0 %v1496_v7  ;;  %307 = vmatpush.msra.mxu3 %v1555_v42 }
  0x11   :  { %441 = vmatpush.msra.mxu1 %v1555_v42  ;;  %170 = vmatpush.msra.mxu2 %v1560_v43 }
  0x12   :  { %99 = vmatpush.msra.mxu0 %v1499_v8  ;;  %308 = vmatpush.msra.mxu3 %v1560_v43 }
  0x13   :  { %442 = vmatpush.msra.mxu1 %v1560_v43  ;;  %171 = vmatpush.msra.mxu2 %v1565_v44 }
  0x14   :  { %100 = vmatpush.msra.mxu0 %v1503_v9  ;;  %309 = vmatpush.msra.mxu3 %v1565_v44 }
  0x15   :  { %443 = vmatpush.msra.mxu1 %v1565_v44  ;;  %172 = vmatpush.msra.mxu2 %v1570_v45 }
  0x16   :  { %369 = vmatpush.msrb.mxu0 %v1481_v2  ;;  %310 = vmatpush.msra.mxu3 %v1570_v45 }
  0x17   :  { %444 = vmatpush.msra.mxu1 %v1570_v45  ;;  %173 = vmatpush.msra.mxu2 %v1581_v48 }
  0x18   :  { %370 = vmatpush.msrb.mxu0 %v1483_v3  ;;  %311 = vmatpush.msra.mxu3 %v1581_v48 }
  0x19   :  { %235 = vmatpush.msrb.mxu2 %v1481_v2  ;;  %445 = vmatpush.msra.mxu1 %v1581_v48 }
  0x1a   :  { %371 = vmatpush.msrb.mxu0 %v1487_v4  ;;  %572 = vmatpush.msrb.mxu3 %v1544_v39 }
  0x1b   :  { %706 = vmatpush.msrb.mxu1 %v1544_v39  ;;  %236 = vmatpush.msrb.mxu2 %v1483_v3 }
  0x1c   :  { %372 = vmatpush.msrb.mxu0 %v1490_v5  ;;  %573 = vmatpush.msrb.mxu3 %v1546_v40 }
  0x1d   :  { %707 = vmatpush.msrb.mxu1 %v1546_v40  ;;  %237 = vmatpush.msrb.mxu2 %v1487_v4 }
  0x1e   :  { %373 = vmatpush.msrb.mxu0 %v1493_v6  ;;  %574 = vmatpush.msrb.mxu3 %v1550_v41 }
  0x1f   :  { %708 = vmatpush.msrb.mxu1 %v1550_v41  ;;  %238 = vmatpush.msrb.mxu2 %v1490_v5 }
  0x20   :  { %374 = vmatpush.msrb.mxu0 %v1496_v7  ;;  %575 = vmatpush.msrb.mxu3 %v1555_v42 }
  0x21   :  { %709 = vmatpush.msrb.mxu1 %v1555_v42  ;;  %239 = vmatpush.msrb.mxu2 %v1493_v6 }
  0x22   :  { %375 = vmatpush.msrb.mxu0 %v1499_v8  ;;  %576 = vmatpush.msrb.mxu3 %v1560_v43 }
  0x23   :  { %710 = vmatpush.msrb.mxu1 %v1560_v43  ;;  %240 = vmatpush.msrb.mxu2 %v1496_v7 }
  0x24   :  { %376 = vmatpush.msrb.mxu0 %v1503_v9  ;;  %577 = vmatpush.msrb.mxu3 %v1565_v44 }
  0x25   :  { %711 = vmatpush.msrb.mxu1 %v1565_v44  ;;  %241 = vmatpush.msrb.mxu2 %v1499_v8 }
  0x26   :  { %578 = vmatpush.msrb.mxu3 %v1570_v45 }
  0x27   :  { %712 = vmatpush.msrb.mxu1 %v1570_v45  ;;  %242 = vmatpush.msrb.mxu2 %v1503_v9 }
  0x28   :  { %579 = vmatpush.msrb.mxu3 %v1581_v48 }
  0x29   :  { %713 = vmatpush.msrb.mxu1 %v1581_v48 }
  0x79   :  { %v77_v12 = vpop.permute.xlu0 %76 }
  0x7a   :  { %v80_v13 = vsel %vm79_vm0, %v74_v11, %v77_v12 }
  0x7b   :  { %1245 = vmatmul.msk.f32.vlgmr.msra.gmra.mxu0 %vm81_vm1, %v80_v13 }
  0x7c   :  { %637 = vmatpush.msra.mxu0 %v1481_v2  ;;  %v127_v34 = vpop.permute.xlu1 %126 }
  0x7e   :  { %638 = vmatpush.msra.mxu0 %v1483_v3 }
  0x80   :  { %639 = vmatpush.msra.mxu0 %v1487_v4 }
  0x82   :  { %640 = vmatpush.msra.mxu0 %v1490_v5 }
  0x84   :  { %641 = vmatpush.msra.mxu0 %v1493_v6 }
  0x86   :  { %642 = vmatpush.msra.mxu0 %v1496_v7 }
  0x88   :  { %643 = vmatpush.msra.mxu0 %v1499_v8 }
  0x8a   :  { %644 = vmatpush.msra.mxu0 %v1503_v9 }
  0xf8   :  { %v102_v15 = vpop.f32.mrf.mxu0 }
  0xf9   :  { %v103_v16 = vadd.f32 %v102_v15, %v1531_v14 }
  0xfb   :  { %1285 = vtanh.f32 %v103_v16  ;;  %v1246_v18 = vmul.f32 -1.442695, %v103_v16 }
  0xfd   :  { %1287 = vpow2.f32 %v1246_v18 }
 0x101   :  { %v1286_v17 = vpop.eup %1285 }
 0x102   :  { %131 = vrot.lane.b32.xlu0 %v1286_v17, %s1449_s2 }
 0x103   :  { %v1288_v19 = vpop.eup %1287 }
 0x104   :  { %v108_v20 = vadd.f32 1.0, %v1288_v19 }
 0x106   :  { %1289 = vrcp.f32 %v108_v20  ;;  %v120_v26 = vand.u32 2147483648, %v108_v20  ;;  %vm114_vm3 = vweird.f32 %v108_v20  ;;  %v118_v27 = vand.u32 2147483647, %v108_v20 }
 0x108   :  { %v121_v29 = vor.u32 1.1754944e-38, %v120_v26  ;;  %vm119_vm5 = vcmp.eq.f32.partialorder %v118_v27, 8.507059e+37 }
 0x10a   :  { %151 = vrot.lane.b32.xlu0 %v72_v33, %s1449_s2 }
 0x10c   :  { %v1290_v21 = vpop.eup %1289 }
 0x10d   :  { %v110_v22 = vmul.f32 %v1290_v21, %v108_v20  ;;  %vm115_vm2 = vweird.f32 %v1290_v21 }
 0x10e   :  { %vm116_vm4 = vmor %vm114_vm3, %vm115_vm2 }
 0x10f   :  { %v111_v23 = vsub.f32 1.0, %v110_v22 }
 0x111   :  { %v112_v24 = vmul.f32 %v1290_v21, %v111_v23 }
 0x113   :  { %v113_v25 = vadd.f32 %v1290_v21, %v112_v24 }
 0x115   :  { %v117_v28 = vsel %vm116_vm4, %v1290_v21, %v113_v25 }
 0x116   :  { %v122_v30 = vsel %vm119_vm5, %v121_v29, %v117_v28 }
 0x117   :  { %v129_v35 = vmul.f32 %v127_v34, %v122_v30 }
 0x174   :  { %v132_v31 = vpop.permute.xlu0 %131 }
 0x175   :  { %v134_v32 = vmul.f32 %v132_v31, %v122_v30 }
 0x177   :  { %136 = vrot.lane.b32.xlu1 %v134_v32, %s1449_s2 }
 0x17c   :  { %v152_v50 = vpop.permute.xlu0 %151 }
 0x1e9   :  { %v137_v36 = vpop.permute.xlu1 %136 }
 0x1ea   :  { %v1540_v37 = vadd.f32 %v137_v36, %v129_v35 }
 0x1ec   :  { %1291 = vtanh.f32 %v1540_v37 }
 0x1f2   :  { %v1292_v38 = vpop.eup %1291 }
 0x1f3   :  { %142 = vrot.lane.b32.xlu2 %v1292_v38, %s1449_s2 }
 0x24d   :  { %v143_v46 = vpop.permute.xlu2 %142 }
 0x24e   :  { %v145_v47 = vmul.f32 %v143_v46, %v122_v30 }
 0x250   :  { %220 = vrot.lane.b32.xlu1 %v145_v47, %s1450_s29  ;;  %147 = vrot.lane.b32.xlu2 %v145_v47, %s1451_s30 }
 0x258   :  { %199 = vrot.lane.b32.xlu1 %v73_v49, %s1449_s2 }
 0x2aa   :  { %v148_v51 = vpop.permute.xlu2 %147 }
 0x2ab   :  { %v154_v52 = vsel %vm79_vm0, %v148_v51, %v152_v50 }
 0x2ac   :  { %1247 = vmatmul.msk.f32.vlgmr.msra.gmra.mxu2 %vm81_vm1, %v154_v52 }
 0x2ad   :  { %503 = vmatpush.msra.mxu2 %v1481_v2 }
 0x2af   :  { %504 = vmatpush.msra.mxu2 %v1483_v3 }
 0x2b1   :  { %505 = vmatpush.msra.mxu2 %v1487_v4 }
 0x2b3   :  { %506 = vmatpush.msra.mxu2 %v1490_v5 }
 0x2b5   :  { %507 = vmatpush.msra.mxu2 %v1493_v6 }
 0x2b7   :  { %508 = vmatpush.msra.mxu2 %v1496_v7 }
 0x2b9   :  { %509 = vmatpush.msra.mxu2 %v1499_v8 }
 0x2bb   :  { %510 = vmatpush.msra.mxu2 %v1503_v9 }
 0x2c2   :  { %v221_v54 = vpop.permute.xlu1 %220 }
 0x2c3   :  { %v223_v55 = vsel %vm79_vm0, %v219_v53, %v221_v54 }
 0x2c4   :  { %1249 = vmatmul.msk.f32.vlgmr.msrb.gmra.mxu2 %vm81_vm1, %v223_v55 }
 0x2c5   :  { %771 = vmatpush.msrb.mxu2 %v1481_v2 }
 0x2c7   :  { %772 = vmatpush.msrb.mxu2 %v1483_v3 }
 0x2c9   :  { %773 = vmatpush.msrb.mxu2 %v1487_v4 }
 0x2ca   :  { %v200_v46 = vpop.permute.xlu1 %199 }
 0x2cb   :  { %774 = vmatpush.msrb.mxu2 %v1490_v5 }
 0x2cd   :  { %775 = vmatpush.msrb.mxu2 %v1493_v6 }
 0x2cf   :  { %776 = vmatpush.msrb.mxu2 %v1496_v7 }
 0x2d1   :  { %777 = vmatpush.msrb.mxu2 %v1499_v8 }
 0x2d3   :  { %778 = vmatpush.msrb.mxu2 %v1503_v9 }
 0x32f   :  { %v175_v57 = vpop.f32.mrf.mxu2 }
 0x330   :  { %v176_v58 = vadd.f32 %v175_v57, %v1637_v56 }
 0x332   :  { %1293 = vtanh.f32 %v176_v58  ;;  %v1248_v63 = vmul.f32 -1.442695, %v176_v58 }
 0x338   :  { %v1294_v59 = vpop.eup %1293 }
 0x339   :  { %204 = vrot.lane.b32.xlu2 %v1294_v59, %s1449_s2 }
 0x347   :  { %v244_v60 = vpop.f32.mrf.mxu2 }
 0x348   :  { %v245_v61 = vadd.f32 %v244_v60, %v1531_v14 }
 0x34a   :  { %1295 = vtanh.f32 %v245_v61  ;;  %v1250_v23 = vmul.f32 -1.442695, %v245_v61 }
 0x34b   :  { %1297 = vpow2.f32 %v1248_v63 }
 0x350   :  { %v1296_v62 = vpop.eup %1295 }
 0x351   :  { %269 = vrot.lane.b32.xlu0 %v1296_v62, %s1449_s2  ;;  %v1298_v0 = vpop.eup %1297 }
 0x352   :  { %v181_v1 = vadd.f32 1.0, %v1298_v0 }
 0x354   :  { %1299 = vrcp.f32 %v181_v1  ;;  %v193_v16 = vand.u32 2147483648, %v181_v1  ;;  %vm187_vm7 = vweird.f32 %v181_v1  ;;  %v191_v17 = vand.u32 2147483647, %v181_v1 }
 0x355   :  { %1301 = vpow2.f32 %v1250_v23 }
 0x356   :  { %v194_v19 = vor.u32 1.1754944e-38, %v193_v16  ;;  %vm192_vm9 = vcmp.eq.f32.partialorder %v191_v17, 8.507059e+37 }
 0x35a   :  { %v1300_v10 = vpop.eup %1299 }
 0x35b   :  { %v183_v11 = vmul.f32 %v1300_v10, %v181_v1  ;;  %vm188_vm6 = vweird.f32 %v1300_v10  ;;  %v1302_v24 = vpop.eup %1301 }
 0x35c   :  { %vm189_vm8 = vmor %vm187_vm7, %vm188_vm6  ;;  %v250_v25 = vadd.f32 1.0, %v1302_v24 }
 0x35d   :  { %v184_v12 = vsub.f32 1.0, %v183_v11 }
 0x35e   :  { %1303 = vrcp.f32 %v250_v25  ;;  %v262_v31 = vand.u32 2147483648, %v250_v25  ;;  %vm256_vm11 = vweird.f32 %v250_v25  ;;  %v260_v32 = vand.u32 2147483647, %v250_v25 }
 0x35f   :  { %v185_v13 = vmul.f32 %v1300_v10, %v184_v12 }
 0x360   :  { %v263_v34 = vor.u32 1.1754944e-38, %v262_v31  ;;  %vm261_vm13 = vcmp.eq.f32.partialorder %v260_v32, 8.507059e+37 }
 0x361   :  { %v186_v15 = vadd.f32 %v1300_v10, %v185_v13 }
 0x363   :  { %v190_v18 = vsel %vm189_vm8, %v1300_v10, %v186_v15 }
 0x364   :  { %v195_v20 = vsel %vm192_vm9, %v194_v19, %v190_v18  ;;  %v1304_v26 = vpop.eup %1303 }
 0x365   :  { %v252_v27 = vmul.f32 %v1304_v26, %v250_v25  ;;  %vm257_vm10 = vweird.f32 %v1304_v26  ;;  %v202_v47 = vmul.f32 %v200_v46, %v195_v20 }
 0x366   :  { %vm258_vm12 = vmor %vm256_vm11, %vm257_vm10 }
 0x367   :  { %v253_v28 = vsub.f32 1.0, %v252_v27 }
 0x369   :  { %v254_v29 = vmul.f32 %v1304_v26, %v253_v28 }
 0x36b   :  { %v255_v30 = vadd.f32 %v1304_v26, %v254_v29 }
 0x36d   :  { %v259_v33 = vsel %vm258_vm12, %v1304_v26, %v255_v30 }
 0x36e   :  { %v264_v36 = vsel %vm261_vm13, %v263_v34, %v259_v33 }
 0x36f   :  { %v267_v52 = vmul.f32 %v264_v36, %v1540_v37  ;;  %v353_v37 = vld [vmem:[%s1882_s0 + $0x2] sm:$0x1] }
 0x393   :  { %v205_v21 = vpop.permute.xlu2 %204 }
 0x394   :  { %v207_v22 = vmul.f32 %v205_v21, %v195_v20 }
 0x396   :  { %209 = vrot.lane.b32.xlu2 %v207_v22, %s1449_s2 }
 0x3c3   :  { %v270_v35 = vpop.permute.xlu0 %269 }
 0x3c4   :  { %v272_v38 = vmul.f32 %v270_v35, %v264_v36 }
 0x3c6   :  { %274 = vrot.lane.b32.xlu0 %v272_v38, %s1449_s2 }
 0x3f0   :  { %v210_v49 = vpop.permute.xlu2 %209 }
 0x3f1   :  { %v1645_v50 = vadd.f32 %v210_v49, %v202_v47 }
 0x3f3   :  { %1305 = vtanh.f32 %v1645_v50 }
 0x3f9   :  { %v1306_v51 = vpop.eup %1305 }
 0x3fa   :  { %215 = vrot.lane.b32.xlu1 %v1306_v51, %s1449_s2 }
 0x438   :  { %v275_v53 = vpop.permute.xlu0 %274 }
 0x439   :  { %v1650_v54 = vadd.f32 %v275_v53, %v267_v52 }
 0x43b   :  { %1307 = vtanh.f32 %v1650_v54 }
 0x441   :  { %v1308_v55 = vpop.eup %1307 }
 0x442   :  { %280 = vrot.lane.b32.xlu2 %v1308_v55, %s1449_s2 }
 0x46c   :  { %v216_v57 = vpop.permute.xlu1 %215 }
 0x46d   :  { %v218_v58 = vmul.f32 %v216_v57, %v195_v20 }
 0x46f   :  { %289 = vrot.lane.b32.xlu1 %v218_v58, %s1450_s29 }
 0x49c   :  { %v281_v59 = vpop.permute.xlu2 %280 }
 0x49d   :  { %v283_v60 = vmul.f32 %v281_v59, %v264_v36 }
 0x49f   :  { %354 = vrot.lane.b32.xlu2 %v283_v60, %s1450_s29  ;;  %285 = vrot.lane.b32.xlu0 %v283_v60, %s1451_s30 }
 0x4e1   :  { %v290_v63 = vpop.permute.xlu1 %289 }
 0x4f9   :  { %v355_v61 = vpop.permute.xlu2 %354 }
 0x4fa   :  { %v357_v62 = vsel %vm79_vm0, %v353_v37, %v355_v61 }
 0x4fb   :  { %1253 = vmatmul.msk.f32.vlgmr.msrb.gmra.mxu0 %vm81_vm1, %v357_v62 }
 0x4fc   :  { %905 = vmatpush.msrb.mxu0 %v1481_v2 }
 0x4fe   :  { %906 = vmatpush.msrb.mxu0 %v1483_v3 }
 0x500   :  { %907 = vmatpush.msrb.mxu0 %v1487_v4 }
 0x502   :  { %908 = vmatpush.msrb.mxu0 %v1490_v5 }
 0x504   :  { %909 = vmatpush.msrb.mxu0 %v1493_v6 }
 0x506   :  { %910 = vmatpush.msrb.mxu0 %v1496_v7 }
 0x508   :  { %911 = vmatpush.msrb.mxu0 %v1499_v8 }
 0x50a   :  { %912 = vmatpush.msrb.mxu0 %v1503_v9 }
 0x511   :  { %v286_v0 = vpop.permute.xlu0 %285 }
 0x512   :  { %v292_v1 = vsel %vm79_vm0, %v286_v0, %v290_v63 }
 0x513   :  { %1251 = vmatmul.msk.f32.vlgmr.msra.gmra.mxu3 %vm81_vm1, %v292_v1 }
 0x514   :  { %840 = vmatpush.msra.mxu3 %v1544_v39 }
 0x516   :  { %841 = vmatpush.msra.mxu3 %v1546_v40 }
 0x518   :  { %842 = vmatpush.msra.mxu3 %v1550_v41 }
 0x51a   :  { %843 = vmatpush.msra.mxu3 %v1555_v42 }
 0x51c   :  { %844 = vmatpush.msra.mxu3 %v1560_v43 }
 0x51e   :  { %845 = vmatpush.msra.mxu3 %v1565_v44 }
 0x520   :  { %846 = vmatpush.msra.mxu3 %v1570_v45 }
 0x522   :  { %847 = vmatpush.msra.mxu3 %v1581_v48 }
 0x578   :  { %v378_v10 = vpop.f32.mrf.mxu0 }
 0x579   :  { %v379_v11 = vadd.f32 %v378_v10, %v1531_v14 }
 0x57b   :  { %1309 = vtanh.f32 %v379_v11  ;;  %v1254_v17 = vmul.f32 -1.442695, %v379_v11 }
 0x581   :  { %v1310_v12 = vpop.eup %1309 }
 0x582   :  { %403 = vrot.lane.b32.xlu0 %v1310_v12, %s1449_s2 }
 0x596   :  { %v313_v13 = vpop.f32.mrf.mxu3 }
 0x597   :  { %v314_v15 = vadd.f32 %v313_v13, %v1637_v56 }
 0x599   :  { %1311 = vtanh.f32 %v314_v15  ;;  %v1252_v22 = vmul.f32 -1.442695, %v314_v15 }
 0x59a   :  { %1313 = vpow2.f32 %v1254_v17 }
 0x59f   :  { %v1312_v16 = vpop.eup %1311 }
 0x5a0   :  { %338 = vrot.lane.b32.xlu1 %v1312_v16, %s1449_s2  ;;  %v1314_v18 = vpop.eup %1313 }
 0x5a1   :  { %v384_v19 = vadd.f32 1.0, %v1314_v18 }
 0x5a3   :  { %1315 = vrcp.f32 %v384_v19  ;;  %v396_v26 = vand.u32 2147483648, %v384_v19  ;;  %vm390_vm15 = vweird.f32 %v384_v19  ;;  %v394_v28 = vand.u32 2147483647, %v384_v19 }
 0x5a4   :  { %1317 = vpow2.f32 %v1252_v22 }
 0x5a5   :  { %v397_v31 = vor.u32 1.1754944e-38, %v396_v26  ;;  %vm395_vm3 = vcmp.eq.f32.partialorder %v394_v28, 8.507059e+37 }
 0x5a9   :  { %v1316_v20 = vpop.eup %1315 }
 0x5aa   :  { %v386_v21 = vmul.f32 %v1316_v20, %v384_v19  ;;  %vm391_vm14 = vweird.f32 %v1316_v20  ;;  %v1318_v27 = vpop.eup %1317 }
 0x5ab   :  { %vm392_vm2 = vmor %vm390_vm15, %vm391_vm14  ;;  %v319_v30 = vadd.f32 1.0, %v1318_v27 }
 0x5ac   :  { %v387_v23 = vsub.f32 1.0, %v386_v21 }
 0x5ad   :  { %1319 = vrcp.f32 %v319_v30  ;;  %v331_v49 = vand.u32 2147483648, %v319_v30  ;;  %vm325_vm5 = vweird.f32 %v319_v30  ;;  %v329_v51 = vand.u32 2147483647, %v319_v30 }
 0x5ae   :  { %v388_v24 = vmul.f32 %v1316_v20, %v387_v23 }
 0x5af   :  { %v332_v53 = vor.u32 1.1754944e-38, %v331_v49  ;;  %vm330_vm7 = vcmp.eq.f32.partialorder %v329_v51, 8.507059e+37 }
 0x5b0   :  { %v389_v25 = vadd.f32 %v1316_v20, %v388_v24 }
 0x5b2   :  { %v393_v29 = vsel %vm392_vm2, %v1316_v20, %v389_v25 }
 0x5b3   :  { %v398_v32 = vsel %vm395_vm3, %v397_v31, %v393_v29  ;;  %v1320_v35 = vpop.eup %1319 }
 0x5b4   :  { %v321_v36 = vmul.f32 %v1320_v35, %v319_v30  ;;  %vm326_vm4 = vweird.f32 %v1320_v35  ;;  %v401_v59 = vmul.f32 %v398_v32, %v1650_v54 }
 0x5b5   :  { %vm327_vm6 = vmor %vm325_vm5, %vm326_vm4 }
 0x5b6   :  { %v322_v38 = vsub.f32 1.0, %v321_v36 }
 0x5b8   :  { %v323_v46 = vmul.f32 %v1320_v35, %v322_v38 }
 0x5ba   :  { %v324_v47 = vadd.f32 %v1320_v35, %v323_v46 }
 0x5bc   :  { %v328_v52 = vsel %vm327_vm6, %v1320_v35, %v324_v47 }
 0x5bd   :  { %v333_v57 = vsel %vm330_vm7, %v332_v53, %v328_v52 }
 0x5be   :  { %v336_v62 = vmul.f32 %v333_v57, %v1645_v50  ;;  %v487_v50 = vld [vmem:[%s1882_s0 + $0x3] sm:$0x1] }
 0x5f4   :  { %v404_v33 = vpop.permute.xlu0 %403 }
 0x5f5   :  { %v406_v34 = vmul.f32 %v404_v33, %v398_v32 }
 0x5f7   :  { %408 = vrot.lane.b32.xlu2 %v406_v34, %s1449_s2 }
 0x612   :  { %v339_v55 = vpop.permute.xlu1 %338 }
 0x613   :  { %v341_v58 = vmul.f32 %v339_v55, %v333_v57 }
 0x615   :  { %343 = vrot.lane.b32.xlu0 %v341_v58, %s1449_s2 }
 0x651   :  { %v409_v60 = vpop.permute.xlu2 %408 }
 0x652   :  { %v1687_v37 = vadd.f32 %v409_v60, %v401_v59 }
 0x654   :  { %1321 = vtanh.f32 %v1687_v37 }
 0x65a   :  { %v1322_v61 = vpop.eup %1321 }
 0x65b   :  { %414 = vrot.lane.b32.xlu1 %v1322_v61, %s1449_s2 }
 0x687   :  { %v344_v63 = vpop.permute.xlu0 %343 }
 0x688   :  { %v1692_v0 = vadd.f32 %v344_v63, %v336_v62 }
 0x68a   :  { %1323 = vtanh.f32 %v1692_v0 }
 0x690   :  { %v1324_v1 = vpop.eup %1323 }
 0x691   :  { %349 = vrot.lane.b32.xlu2 %v1324_v1, %s1449_s2 }
 0x6cd   :  { %v415_v10 = vpop.permute.xlu1 %414 }
 0x6ce   :  { %v417_v54 = vmul.f32 %v415_v10, %v398_v32 }
 0x6d0   :  { %419 = vrot.lane.b32.xlu1 %v417_v54, %s1451_s30  ;;  %488 = vrot.lane.b32.xlu0 %v417_v54, %s1450_s29 }
 0x6eb   :  { %v350_v11 = vpop.permute.xlu2 %349 }
 0x6ec   :  { %v352_v12 = vmul.f32 %v350_v11, %v333_v57 }
 0x6ee   :  { %423 = vrot.lane.b32.xlu2 %v352_v12, %s1450_s29 }
 0x742   :  { %v489_v13 = vpop.permute.xlu0 %488  ;;  %v420_v16 = vpop.permute.xlu1 %419 }
 0x743   :  { %v491_v15 = vsel %vm79_vm0, %v487_v50, %v489_v13 }
 0x744   :  { %1257 = vmatmul.msk.f32.vlgmr.msra.gmra.mxu2 %vm81_vm1, %v491_v15 }
 0x745   :  { %1039 = vmatpush.msra.mxu2 %v1481_v2 }
 0x747   :  { %1040 = vmatpush.msra.mxu2 %v1483_v3 }
 0x748   :  { %v424_v17 = vpop.permute.xlu2 %423 }
 0x749   :  { %v426_v18 = vsel %vm79_vm0, %v420_v16, %v424_v17  ;;  %1041 = vmatpush.msra.mxu2 %v1487_v4 }
 0x74a   :  { %1255 = vmatmul.msk.f32.vlgmr.msra.gmra.mxu1 %vm81_vm1, %v426_v18 }
 0x74b   :  { %974 = vmatpush.msra.mxu1 %v1544_v39  ;;  %1042 = vmatpush.msra.mxu2 %v1490_v5 }
 0x74d   :  { %975 = vmatpush.msra.mxu1 %v1546_v40  ;;  %1043 = vmatpush.msra.mxu2 %v1493_v6 }
 0x74f   :  { %976 = vmatpush.msra.mxu1 %v1550_v41  ;;  %1044 = vmatpush.msra.mxu2 %v1496_v7 }
 0x751   :  { %977 = vmatpush.msra.mxu1 %v1555_v42  ;;  %1045 = vmatpush.msra.mxu2 %v1499_v8 }
 0x753   :  { %978 = vmatpush.msra.mxu1 %v1560_v43  ;;  %1046 = vmatpush.msra.mxu2 %v1503_v9 }
 0x755   :  { %979 = vmatpush.msra.mxu1 %v1565_v44 }
 0x757   :  { %980 = vmatpush.msra.mxu1 %v1570_v45 }
 0x759   :  { %981 = vmatpush.msra.mxu1 %v1581_v48 }
 0x7c7   :  { %v447_v2 = vpop.f32.mrf.mxu1  ;;  %v512_v3 = vpop.f32.mrf.mxu2 }
 0x7c8   :  { %v448_v4 = vadd.f32 %v447_v2, %v1637_v56  ;;  %v513_v5 = vadd.f32 %v512_v3, %v1531_v14 }
 0x7ca   :  { %1325 = vtanh.f32 %v448_v4  ;;  %v1256_v8 = vmul.f32 -1.442695, %v448_v4  ;;  %v1258_v9 = vmul.f32 -1.442695, %v513_v5 }
 0x7cb   :  { %1327 = vtanh.f32 %v513_v5 }
 0x7cc   :  { %1329 = vpow2.f32 %v1256_v8 }
 0x7cd   :  { %1331 = vpow2.f32 %v1258_v9 }
 0x7d0   :  { %v1326_v6 = vpop.eup %1325 }
 0x7d1   :  { %v1328_v7 = vpop.eup %1327  ;;  %472 = vrot.lane.b32.xlu0 %v1326_v6, %s1449_s2 }
 0x7d2   :  { %537 = vrot.lane.b32.xlu1 %v1328_v7, %s1449_s2  ;;  %v1330_v19 = vpop.eup %1329 }
 0x7d3   :  { %v1332_v20 = vpop.eup %1331  ;;  %v453_v21 = vadd.f32 1.0, %v1330_v19 }
 0x7d4   :  { %v518_v22 = vadd.f32 1.0, %v1332_v20 }
 0x7d5   :  { %1333 = vrcp.f32 %v453_v21  ;;  %v465_v33 = vand.u32 2147483648, %v453_v21  ;;  %vm459_vm10 = vweird.f32 %v453_v21  ;;  %v463_v35 = vand.u32 2147483647, %v453_v21 }
 0x7d6   :  { %1335 = vrcp.f32 %v518_v22  ;;  %v530_v34 = vand.u32 2147483648, %v518_v22  ;;  %vm524_vm11 = vweird.f32 %v518_v22  ;;  %v528_v36 = vand.u32 2147483647, %v518_v22 }
 0x7d7   :  { %v466_v47 = vor.u32 1.1754944e-38, %v465_v33  ;;  %vm464_vm14 = vcmp.eq.f32.partialorder %v463_v35, 8.507059e+37 }
 0x7d8   :  { %v531_v49 = vor.u32 1.1754944e-38, %v530_v34  ;;  %vm529_vm15 = vcmp.eq.f32.partialorder %v528_v36, 8.507059e+37 }
 0x7db   :  { %v1334_v23 = vpop.eup %1333 }
 0x7dc   :  { %v1336_v24 = vpop.eup %1335  ;;  %v455_v25 = vmul.f32 %v1334_v23, %v453_v21  ;;  %vm460_vm8 = vweird.f32 %v1334_v23 }
 0x7dd   :  { %v520_v26 = vmul.f32 %v1336_v24, %v518_v22  ;;  %vm525_vm9 = vweird.f32 %v1336_v24  ;;  %vm461_vm12 = vmor %vm459_vm10, %vm460_vm8 }
 0x7de   :  { %v456_v27 = vsub.f32 1.0, %v455_v25  ;;  %vm526_vm13 = vmor %vm524_vm11, %vm525_vm9 }
 0x7df   :  { %v521_v28 = vsub.f32 1.0, %v520_v26 }
 0x7e0   :  { %v457_v29 = vmul.f32 %v1334_v23, %v456_v27 }
 0x7e1   :  { %v522_v30 = vmul.f32 %v1336_v24, %v521_v28 }
 0x7e2   :  { %v458_v31 = vadd.f32 %v1334_v23, %v457_v29 }
 0x7e3   :  { %v523_v32 = vadd.f32 %v1336_v24, %v522_v30 }
 0x7e4   :  { %v462_v38 = vsel %vm461_vm12, %v1334_v23, %v458_v31 }
 0x7e5   :  { %v527_v46 = vsel %vm526_vm13, %v1336_v24, %v523_v32  ;;  %v467_v52 = vsel %vm464_vm14, %v466_v47, %v462_v38 }
 0x7e6   :  { %v532_v55 = vsel %vm529_vm15, %v531_v49, %v527_v46  ;;  %v470_v59 = vmul.f32 %v467_v52, %v1692_v0 }
 0x7e7   :  { %v535_v63 = vmul.f32 %v532_v55, %v1687_v37  ;;  %v621_v37 = vld [vmem:[%s1882_s0 + $0x4] sm:$0x1] }
 0x843   :  { %v473_v51 = vpop.permute.xlu0 %472 }
 0x844   :  { %v538_v53 = vpop.permute.xlu1 %537  ;;  %v475_v57 = vmul.f32 %v473_v51, %v467_v52 }
 0x845   :  { %v540_v58 = vmul.f32 %v538_v53, %v532_v55 }
 0x846   :  { %477 = vrot.lane.b32.xlu2 %v475_v57, %s1449_s2 }
 0x847   :  { %542 = vrot.lane.b32.xlu0 %v540_v58, %s1449_s2 }
 0x8a0   :  { %v478_v60 = vpop.permute.xlu2 %477 }
 0x8a1   :  { %v1729_v61 = vadd.f32 %v478_v60, %v470_v59 }
 0x8a3   :  { %1337 = vtanh.f32 %v1729_v61 }
 0x8a9   :  { %v1338_v62 = vpop.eup %1337 }
 0x8aa   :  { %483 = vrot.lane.b32.xlu1 %v1338_v62, %s1449_s2 }
 0x8b9   :  { %v543_v1 = vpop.permute.xlu0 %542 }
 0x8ba   :  { %v1734_v10 = vadd.f32 %v543_v1, %v535_v63 }
 0x8bc   :  { %1339 = vtanh.f32 %v1734_v10 }
 0x8c2   :  { %v1340_v54 = vpop.eup %1339 }
 0x8c3   :  { %548 = vrot.lane.b32.xlu2 %v1340_v54, %s1449_s2 }
 0x91c   :  { %v484_v11 = vpop.permute.xlu1 %483 }
 0x91d   :  { %v549_v0 = vpop.permute.xlu2 %548  ;;  %v486_v12 = vmul.f32 %v484_v11, %v467_v52 }
 0x91e   :  { %v551_v50 = vmul.f32 %v549_v0, %v532_v55 }
 0x91f   :  { %557 = vrot.lane.b32.xlu1 %v486_v12, %s1450_s29 }
 0x920   :  { %622 = vrot.lane.b32.xlu2 %v551_v50, %s1450_s29  ;;  %553 = vrot.lane.b32.xlu0 %v551_v50, %s1451_s30 }
 0x97a   :  { %v623_v13 = vpop.permute.xlu2 %622 }
 0x97b   :  { %v625_v15 = vsel %vm79_vm0, %v621_v37, %v623_v13 }
 0x97c   :  { %1261 = vmatmul.msk.f32.vlgmr.msra.gmra.mxu0 %vm81_vm1, %v625_v15 }
 0x991   :  { %v558_v16 = vpop.permute.xlu1 %557 }
 0x992   :  { %v554_v17 = vpop.permute.xlu0 %553 }
 0x993   :  { %v560_v18 = vsel %vm79_vm0, %v554_v17, %v558_v16 }
 0x994   :  { %1259 = vmatmul.msk.f32.vlgmr.msrb.gmra.mxu3 %vm81_vm1, %v560_v18 }
 0x995   :  { %1108 = vmatpush.msrb.mxu3 %v1544_v39 }
 0x997   :  { %1109 = vmatpush.msrb.mxu3 %v1546_v40 }
 0x999   :  { %1110 = vmatpush.msrb.mxu3 %v1550_v41 }
 0x99b   :  { %1111 = vmatpush.msrb.mxu3 %v1555_v42 }
 0x99d   :  { %1112 = vmatpush.msrb.mxu3 %v1560_v43 }
 0x99f   :  { %1113 = vmatpush.msrb.mxu3 %v1565_v44 }
 0x9a1   :  { %1114 = vmatpush.msrb.mxu3 %v1570_v45 }
 0x9a3   :  { %1115 = vmatpush.msrb.mxu3 %v1581_v48 }
 0x9f9   :  { %v646_v2 = vpop.f32.mrf.mxu0 }
 0x9fa   :  { %v647_v3 = vadd.f32 %v646_v2, %v1531_v14 }
 0x9fc   :  { %1341 = vtanh.f32 %v647_v3  ;;  %v1262_v42 = vmul.f32 -1.442695, %v647_v3 }
 0xa02   :  { %v1342_v4 = vpop.eup %1341 }
 0xa03   :  { %671 = vrot.lane.b32.xlu0 %v1342_v4, %s1449_s2 }
 0xa17   :  { %v581_v39 = vpop.f32.mrf.mxu3 }
 0xa18   :  { %v582_v40 = vadd.f32 %v581_v39, %v1637_v56 }
 0xa1a   :  { %1343 = vtanh.f32 %v582_v40  ;;  %v1260_v5 = vmul.f32 -1.442695, %v582_v40 }
 0xa1b   :  { %1345 = vpow2.f32 %v1262_v42 }
 0xa20   :  { %v1344_v41 = vpop.eup %1343 }
 0xa21   :  { %606 = vrot.lane.b32.xlu1 %v1344_v41, %s1449_s2  ;;  %v1346_v43 = vpop.eup %1345 }
 0xa22   :  { %v652_v44 = vadd.f32 1.0, %v1346_v43 }
 0xa24   :  { %1347 = vrcp.f32 %v652_v44  ;;  %v664_v9 = vand.u32 2147483648, %v652_v44  ;;  %vm658_vm3 = vweird.f32 %v652_v44  ;;  %v662_v20 = vand.u32 2147483647, %v652_v44 }
 0xa25   :  { %1349 = vpow2.f32 %v1260_v5 }
 0xa26   :  { %v665_v23 = vor.u32 1.1754944e-38, %v664_v9  ;;  %vm663_vm5 = vcmp.eq.f32.partialorder %v662_v20, 8.507059e+37 }
 0xa2a   :  { %v1348_v45 = vpop.eup %1347 }
 0xa2b   :  { %v654_v48 = vmul.f32 %v1348_v45, %v652_v44  ;;  %vm659_vm2 = vweird.f32 %v1348_v45  ;;  %v1350_v19 = vpop.eup %1349 }
 0xa2c   :  { %vm660_vm4 = vmor %vm658_vm3, %vm659_vm2  ;;  %v587_v22 = vadd.f32 1.0, %v1350_v19 }
 0xa2d   :  { %v655_v6 = vsub.f32 1.0, %v654_v48 }
 0xa2e   :  { %1351 = vrcp.f32 %v587_v22  ;;  %v599_v32 = vand.u32 2147483648, %v587_v22  ;;  %vm593_vm7 = vweird.f32 %v587_v22  ;;  %v597_v33 = vand.u32 2147483647, %v587_v22 }
 0xa2f   :  { %v656_v7 = vmul.f32 %v1348_v45, %v655_v6 }
 0xa30   :  { %v600_v35 = vor.u32 1.1754944e-38, %v599_v32  ;;  %vm598_vm9 = vcmp.eq.f32.partialorder %v597_v33, 8.507059e+37 }
 0xa31   :  { %v657_v8 = vadd.f32 %v1348_v45, %v656_v7 }
 0xa33   :  { %v661_v21 = vsel %vm660_vm4, %v1348_v45, %v657_v8 }
 0xa34   :  { %v666_v24 = vsel %vm663_vm5, %v665_v23, %v661_v21  ;;  %v1352_v27 = vpop.eup %1351 }
 0xa35   :  { %v589_v28 = vmul.f32 %v1352_v27, %v587_v22  ;;  %vm594_vm6 = vweird.f32 %v1352_v27  ;;  %v669_v47 = vmul.f32 %v666_v24, %v1734_v10 }
 0xa36   :  { %vm595_vm8 = vmor %vm593_vm7, %vm594_vm6 }
 0xa37   :  { %v590_v29 = vsub.f32 1.0, %v589_v28 }
 0xa39   :  { %v591_v30 = vmul.f32 %v1352_v27, %v590_v29 }
 0xa3b   :  { %v592_v31 = vadd.f32 %v1352_v27, %v591_v30 }
 0xa3d   :  { %v596_v34 = vsel %vm595_vm8, %v1352_v27, %v592_v31 }
 0xa3e   :  { %v601_v38 = vsel %vm598_vm9, %v600_v35, %v596_v34 }
 0xa3f   :  { %v604_v53 = vmul.f32 %v601_v38, %v1729_v61  ;;  %v755_v61 = vld [vmem:[%s1882_s0 + $0x5] sm:$0x1] }
 0xa75   :  { %v672_v25 = vpop.permute.xlu0 %671 }
 0xa76   :  { %v674_v26 = vmul.f32 %v672_v25, %v666_v24 }
 0xa78   :  { %676 = vrot.lane.b32.xlu2 %v674_v26, %s1449_s2 }
 0xa93   :  { %v607_v36 = vpop.permute.xlu1 %606 }
 0xa94   :  { %v609_v46 = vmul.f32 %v607_v36, %v601_v38 }
 0xa96   :  { %611 = vrot.lane.b32.xlu0 %v609_v46, %s1449_s2 }
 0xad2   :  { %v677_v49 = vpop.permute.xlu2 %676 }
 0xad3   :  { %v1763_v51 = vadd.f32 %v677_v49, %v669_v47 }
 0xad5   :  { %1353 = vtanh.f32 %v1763_v51 }
 0xadb   :  { %v1354_v52 = vpop.eup %1353 }
 0xadc   :  { %682 = vrot.lane.b32.xlu1 %v1354_v52, %s1449_s2 }
 0xb08   :  { %v612_v55 = vpop.permute.xlu0 %611 }
 0xb09   :  { %v1768_v57 = vadd.f32 %v612_v55, %v604_v53 }
 0xb0b   :  { %1355 = vtanh.f32 %v1768_v57 }
 0xb11   :  { %v1356_v58 = vpop.eup %1355 }
 0xb12   :  { %617 = vrot.lane.b32.xlu2 %v1356_v58, %s1449_s2 }
 0xb4e   :  { %v683_v59 = vpop.permute.xlu1 %682 }
 0xb4f   :  { %v685_v60 = vmul.f32 %v683_v59, %v666_v24 }
 0xb51   :  { %687 = vrot.lane.b32.xlu1 %v685_v60, %s1451_s30  ;;  %756 = vrot.lane.b32.xlu0 %v685_v60, %s1450_s29 }
 0xb6c   :  { %v618_v62 = vpop.permute.xlu2 %617 }
 0xb6d   :  { %v620_v63 = vmul.f32 %v618_v62, %v601_v38  ;;  %v1808_v62 = vld [vmem:[#allocation2 + $0x120] sm:$0x1] }
 0xb6f   :  { %691 = vrot.lane.b32.xlu2 %v620_v63, %s1450_s29 }
 0xbc3   :  { %v757_v1 = vpop.permute.xlu0 %756  ;;  %v688_v54 = vpop.permute.xlu1 %687 }
 0xbc4   :  { %v759_v10 = vsel %vm79_vm0, %v755_v61, %v757_v1 }
 0xbc5   :  { %1265 = vmatmul.msk.f32.vlgmr.msrb.gmra.mxu2 %vm81_vm1, %v759_v10 }
 0xbc9   :  { %v692_v11 = vpop.permute.xlu2 %691 }
 0xbca   :  { %v694_v0 = vsel %vm79_vm0, %v688_v54, %v692_v11 }
 0xbcb   :  { %1263 = vmatmul.msk.f32.vlgmr.msrb.gmra.mxu1 %vm81_vm1, %v694_v0 }
 0xc48   :  { %v715_v12 = vpop.f32.mrf.mxu1  ;;  %v780_v50 = vpop.f32.mrf.mxu2 }
 0xc49   :  { %v716_v37 = vadd.f32 %v715_v12, %v1637_v56  ;;  %v781_v13 = vadd.f32 %v780_v50, %v1531_v14 }
 0xc4b   :  { %1357 = vtanh.f32 %v716_v37  ;;  %v1264_v17 = vmul.f32 -1.442695, %v716_v37  ;;  %v1266_v18 = vmul.f32 -1.442695, %v781_v13 }
 0xc4c   :  { %1359 = vtanh.f32 %v781_v13 }
 0xc4d   :  { %1361 = vpow2.f32 %v1264_v17 }
 0xc4e   :  { %1363 = vpow2.f32 %v1266_v18 }
 0xc51   :  { %v1358_v15 = vpop.eup %1357 }
 0xc52   :  { %v1360_v16 = vpop.eup %1359  ;;  %740 = vrot.lane.b32.xlu0 %v1358_v15, %s1449_s2 }
 0xc53   :  { %805 = vrot.lane.b32.xlu1 %v1360_v16, %s1449_s2  ;;  %v1362_v2 = vpop.eup %1361 }
 0xc54   :  { %v1364_v3 = vpop.eup %1363  ;;  %v721_v4 = vadd.f32 1.0, %v1362_v2 }
 0xc55   :  { %v786_v39 = vadd.f32 1.0, %v1364_v3 }
 0xc56   :  { %1365 = vrcp.f32 %v721_v4  ;;  %v733_v7 = vand.u32 2147483648, %v721_v4  ;;  %vm727_vm12 = vweird.f32 %v721_v4  ;;  %v731_v9 = vand.u32 2147483647, %v721_v4 }
 0xc57   :  { %1367 = vrcp.f32 %v786_v39  ;;  %v798_v8 = vand.u32 2147483648, %v786_v39  ;;  %vm792_vm13 = vweird.f32 %v786_v39  ;;  %v796_v19 = vand.u32 2147483647, %v786_v39 }
 0xc58   :  { %v734_v22 = vor.u32 1.1754944e-38, %v733_v7  ;;  %vm732_vm2 = vcmp.eq.f32.partialorder %v731_v9, 8.507059e+37 }
 0xc59   :  { %v799_v23 = vor.u32 1.1754944e-38, %v798_v8  ;;  %vm797_vm3 = vcmp.eq.f32.partialorder %v796_v19, 8.507059e+37 }
 0xc5c   :  { %v1366_v40 = vpop.eup %1365 }
 0xc5d   :  { %v1368_v14 = vpop.eup %1367  ;;  %v723_v41 = vmul.f32 %v1366_v40, %v721_v4  ;;  %vm728_vm10 = vweird.f32 %v1366_v40 }
 0xc5e   :  { %v788_v42 = vmul.f32 %v1368_v14, %v786_v39  ;;  %vm793_vm11 = vweird.f32 %v1368_v14  ;;  %vm729_vm14 = vmor %vm727_vm12, %vm728_vm10 }
 0xc5f   :  { %v724_v43 = vsub.f32 1.0, %v723_v41  ;;  %vm794_vm15 = vmor %vm792_vm13, %vm793_vm11 }
 0xc60   :  { %v789_v44 = vsub.f32 1.0, %v788_v42 }
 0xc61   :  { %v725_v45 = vmul.f32 %v1366_v40, %v724_v43 }
 0xc62   :  { %v790_v48 = vmul.f32 %v1368_v14, %v789_v44 }
 0xc63   :  { %v726_v5 = vadd.f32 %v1366_v40, %v725_v45 }
 0xc64   :  { %v791_v6 = vadd.f32 %v1368_v14, %v790_v48 }
 0xc65   :  { %v730_v20 = vsel %vm729_vm14, %v1366_v40, %v726_v5 }
 0xc66   :  { %v795_v21 = vsel %vm794_vm15, %v1368_v14, %v791_v6  ;;  %v735_v25 = vsel %vm732_vm2, %v734_v22, %v730_v20 }
 0xc67   :  { %v800_v27 = vsel %vm797_vm3, %v799_v23, %v795_v21  ;;  %v738_v30 = vmul.f32 %v735_v25, %v1768_v57 }
 0xc68   :  { %v803_v34 = vmul.f32 %v800_v27, %v1763_v51  ;;  %v889_v51 = vld [vmem:[%s1882_s0 + $0x6] sm:$0x1] }
 0xcc4   :  { %v741_v24 = vpop.permute.xlu0 %740 }
 0xcc5   :  { %v806_v26 = vpop.permute.xlu1 %805  ;;  %v743_v28 = vmul.f32 %v741_v24, %v735_v25 }
 0xcc6   :  { %v808_v29 = vmul.f32 %v806_v26, %v800_v27 }
 0xcc7   :  { %745 = vrot.lane.b32.xlu2 %v743_v28, %s1449_s2 }
 0xcc8   :  { %810 = vrot.lane.b32.xlu0 %v808_v29, %s1449_s2 }
 0xd21   :  { %v746_v31 = vpop.permute.xlu2 %745 }
 0xd22   :  { %v1789_v32 = vadd.f32 %v746_v31, %v738_v30 }
 0xd24   :  { %1369 = vtanh.f32 %v1789_v32 }
 0xd2a   :  { %v1370_v33 = vpop.eup %1369 }
 0xd2b   :  { %751 = vrot.lane.b32.xlu1 %v1370_v33, %s1449_s2 }
 0xd3a   :  { %v811_v35 = vpop.permute.xlu0 %810 }
 0xd3b   :  { %v1794_v36 = vadd.f32 %v811_v35, %v803_v34 }
 0xd3d   :  { %1371 = vtanh.f32 %v1794_v36 }
 0xd43   :  { %v1372_v38 = vpop.eup %1371 }
 0xd44   :  { %816 = vrot.lane.b32.xlu2 %v1372_v38, %s1449_s2 }
 0xd9d   :  { %v752_v46 = vpop.permute.xlu1 %751 }
 0xd9e   :  { %v817_v47 = vpop.permute.xlu2 %816  ;;  %v754_v49 = vmul.f32 %v752_v46, %v735_v25 }
 0xd9f   :  { %v819_v52 = vmul.f32 %v817_v47, %v800_v27 }
 0xda0   :  { %825 = vrot.lane.b32.xlu1 %v754_v49, %s1450_s29 }
 0xda1   :  { %890 = vrot.lane.b32.xlu2 %v819_v52, %s1450_s29  ;;  %821 = vrot.lane.b32.xlu0 %v819_v52, %s1451_s30  ;;  %v1836_v52 = vld [vmem:[#allocation2 + $0x121] sm:$0x1] }
 0xdfb   :  { %v891_v53 = vpop.permute.xlu2 %890 }
 0xdfc   :  { %v893_v55 = vsel %vm79_vm0, %v889_v51, %v891_v53 }
 0xdfd   :  { %1269 = vmatmul.msk.f32.vlgmr.msrb.gmra.mxu0 %vm81_vm1, %v893_v55 }
 0xe12   :  { %v826_v57 = vpop.permute.xlu1 %825 }
 0xe13   :  { %v822_v58 = vpop.permute.xlu0 %821 }
 0xe14   :  { %v828_v59 = vsel %vm79_vm0, %v822_v58, %v826_v57 }
 0xe15   :  { %1267 = vmatmul.msk.f32.vlgmr.msra.gmra.mxu3 %vm81_vm1, %v828_v59 }
 0xe7a   :  { %v914_v60 = vpop.f32.mrf.mxu0 }
 0xe7b   :  { %v915_v63 = vadd.f32 %v1808_v62, %v914_v60 }
 0xe7d   :  { %1373 = vtanh.f32 %v915_v63  ;;  %v1270_v11 = vmul.f32 -1.442695, %v915_v63 }
 0xe83   :  { %v1374_v61 = vpop.eup %1373 }
 0xe84   :  { %939 = vrot.lane.b32.xlu0 %v1374_v61, %s1449_s2 }
 0xe98   :  { %v849_v1 = vpop.f32.mrf.mxu3 }
 0xe99   :  { %v850_v10 = vadd.f32 %v849_v1, %v1637_v56 }
 0xe9b   :  { %1375 = vtanh.f32 %v850_v10  ;;  %v1268_v13 = vmul.f32 -1.442695, %v850_v10 }
 0xe9c   :  { %1377 = vpow2.f32 %v1270_v11 }
 0xea1   :  { %v1376_v54 = vpop.eup %1375 }
 0xea2   :  { %874 = vrot.lane.b32.xlu1 %v1376_v54, %s1449_s2  ;;  %v1378_v0 = vpop.eup %1377 }
 0xea3   :  { %v920_v12 = vadd.f32 1.0, %v1378_v0 }
 0xea5   :  { %1379 = vrcp.f32 %v920_v12  ;;  %v932_v18 = vand.u32 2147483648, %v920_v12  ;;  %vm926_vm5 = vweird.f32 %v920_v12  ;;  %v930_v56 = vand.u32 2147483647, %v920_v12 }
 0xea6   :  { %1381 = vpow2.f32 %v1268_v13 }
 0xea7   :  { %v933_v39 = vor.u32 1.1754944e-38, %v932_v18  ;;  %vm931_vm7 = vcmp.eq.f32.partialorder %v930_v56, 8.507059e+37 }
 0xeab   :  { %v1380_v50 = vpop.eup %1379 }
 0xeac   :  { %v922_v37 = vmul.f32 %v1380_v50, %v920_v12  ;;  %vm927_vm4 = vweird.f32 %v1380_v50  ;;  %v1382_v2 = vpop.eup %1381 }
 0xead   :  { %vm928_vm6 = vmor %vm926_vm5, %vm927_vm4  ;;  %v855_v4 = vadd.f32 1.0, %v1382_v2 }
 0xeae   :  { %v923_v15 = vsub.f32 1.0, %v922_v37 }
 0xeaf   :  { %1383 = vrcp.f32 %v855_v4  ;;  %v867_v5 = vand.u32 2147483648, %v855_v4  ;;  %vm861_vm9 = vweird.f32 %v855_v4  ;;  %v865_v6 = vand.u32 2147483647, %v855_v4 }
 0xeb0   :  { %v924_v16 = vmul.f32 %v1380_v50, %v923_v15 }
 0xeb1   :  { %v868_v8 = vor.u32 1.1754944e-38, %v867_v5  ;;  %vm866_vm11 = vcmp.eq.f32.partialorder %v865_v6, 8.507059e+37 }
 0xeb2   :  { %v925_v17 = vadd.f32 %v1380_v50, %v924_v16 }
 0xeb4   :  { %v929_v3 = vsel %vm928_vm6, %v1380_v50, %v925_v17 }
 0xeb5   :  { %v934_v40 = vsel %vm931_vm7, %v933_v39, %v929_v3  ;;  %v1384_v42 = vpop.eup %1383 }
 0xeb6   :  { %v857_v43 = vmul.f32 %v1384_v42, %v855_v4  ;;  %vm862_vm8 = vweird.f32 %v1384_v42  ;;  %v937_v21 = vmul.f32 %v934_v40, %v1794_v36 }
 0xeb7   :  { %vm863_vm10 = vmor %vm861_vm9, %vm862_vm8 }
 0xeb8   :  { %v858_v44 = vsub.f32 1.0, %v857_v43 }
 0xeba   :  { %v859_v45 = vmul.f32 %v1384_v42, %v858_v44 }
 0xebc   :  { %v860_v48 = vadd.f32 %v1384_v42, %v859_v45 }
 0xebe   :  { %v864_v7 = vsel %vm863_vm10, %v1384_v42, %v860_v48  ;;  %vm1206_vm10 = vcmask 1040384  }
 0xebf   :  { %v869_v19 = vsel %vm866_vm11, %v868_v8, %v864_v7 }
 0xec0   :  { %v872_v25 = vmul.f32 %v869_v19, %v1789_v32  ;;  %v1023_v32 = vld [vmem:[%s1882_s0 + $0x7] sm:$0x1] }
 0xef6   :  { %v940_v14 = vpop.permute.xlu0 %939 }
 0xef7   :  { %v942_v41 = vmul.f32 %v940_v14, %v934_v40 }
 0xef9   :  { %944 = vrot.lane.b32.xlu2 %v942_v41, %s1449_s2 }
 0xf14   :  { %v875_v9 = vpop.permute.xlu1 %874 }
 0xf15   :  { %v877_v20 = vmul.f32 %v875_v9, %v869_v19 }
 0xf17   :  { %879 = vrot.lane.b32.xlu0 %v877_v20, %s1449_s2 }
 0xf53   :  { %v945_v22 = vpop.permute.xlu2 %944 }
 0xf54   :  { %v1817_v23 = vadd.f32 %v945_v22, %v937_v21 }
 0xf56   :  { %1385 = vtanh.f32 %v1817_v23 }
 0xf5c   :  { %v1386_v24 = vpop.eup %1385 }
 0xf5d   :  { %950 = vrot.lane.b32.xlu1 %v1386_v24, %s1449_s2 }
 0xf89   :  { %v880_v26 = vpop.permute.xlu0 %879 }
 0xf8a   :  { %v1822_v27 = vadd.f32 %v880_v26, %v872_v25 }
 0xf8c   :  { %1387 = vtanh.f32 %v1822_v27 }
 0xf92   :  { %v1388_v28 = vpop.eup %1387 }
 0xf93   :  { %885 = vrot.lane.b32.xlu2 %v1388_v28, %s1449_s2 }
 0xfcf   :  { %v951_v29 = vpop.permute.xlu1 %950 }
 0xfd0   :  { %v953_v30 = vmul.f32 %v951_v29, %v934_v40 }
 0xfd2   :  { %955 = vrot.lane.b32.xlu1 %v953_v30, %s1451_s30  ;;  %1024 = vrot.lane.b32.xlu0 %v953_v30, %s1450_s29 }
 0xfed   :  { %v886_v31 = vpop.permute.xlu2 %885 }
 0xfee   :  { %v888_v33 = vmul.f32 %v886_v31, %v869_v19 }
 0xff0   :  { %959 = vrot.lane.b32.xlu2 %v888_v33, %s1450_s29 }
0x1044   :  { %v1025_v34 = vpop.permute.xlu0 %1024  ;;  %v956_v36 = vpop.permute.xlu1 %955 }
0x1045   :  { %v1027_v35 = vsel %vm79_vm0, %v1023_v32, %v1025_v34 }
0x1046   :  { %1273 = vmatmul.msk.f32.vlgmr.msra.gmra.mxu2 %vm81_vm1, %v1027_v35 }
0x104a   :  { %v960_v38 = vpop.permute.xlu2 %959 }
0x104b   :  { %v962_v46 = vsel %vm79_vm0, %v956_v36, %v960_v38 }
0x104c   :  { %1271 = vmatmul.msk.f32.vlgmr.msra.gmra.mxu1 %vm81_vm1, %v962_v46 }
0x10c9   :  { %v983_v47 = vpop.f32.mrf.mxu1  ;;  %v1048_v49 = vpop.f32.mrf.mxu2 }
0x10ca   :  { %v984_v51 = vadd.f32 %v1836_v52, %v983_v47  ;;  %v1049_v53 = vadd.f32 %v1808_v62, %v1048_v49 }
0x10cc   :  { %1389 = vtanh.f32 %v984_v51  ;;  %v1272_v58 = vmul.f32 -1.442695, %v984_v51  ;;  %v1274_v59 = vmul.f32 -1.442695, %v1049_v53 }
0x10cd   :  { %1391 = vtanh.f32 %v1049_v53 }
0x10ce   :  { %1393 = vpow2.f32 %v1272_v58 }
0x10cf   :  { %1395 = vpow2.f32 %v1274_v59 }
0x10d2   :  { %v1390_v55 = vpop.eup %1389 }
0x10d3   :  { %v1392_v57 = vpop.eup %1391  ;;  %1008 = vrot.lane.b32.xlu0 %v1390_v55, %s1449_s2 }
0x10d4   :  { %1073 = vrot.lane.b32.xlu1 %v1392_v57, %s1449_s2  ;;  %v1394_v60 = vpop.eup %1393 }
0x10d5   :  { %v1396_v63 = vpop.eup %1395  ;;  %v989_v61 = vadd.f32 1.0, %v1394_v60 }
0x10d6   :  { %v1054_v1 = vadd.f32 1.0, %v1396_v63 }
0x10d7   :  { %1397 = vrcp.f32 %v989_v61  ;;  %v1001_v16 = vand.u32 2147483648, %v989_v61  ;;  %vm995_vm14 = vweird.f32 %v989_v61  ;;  %v999_v18 = vand.u32 2147483647, %v989_v61 }
0x10d8   :  { %1399 = vrcp.f32 %v1054_v1  ;;  %v1066_v17 = vand.u32 2147483648, %v1054_v1  ;;  %vm1060_vm15 = vweird.f32 %v1054_v1  ;;  %v1064_v2 = vand.u32 2147483647, %v1054_v1 }
0x10d9   :  { %v1002_v4 = vor.u32 1.1754944e-38, %v1001_v16  ;;  %vm1000_vm4 = vcmp.eq.f32.partialorder %v999_v18, 8.507059e+37  ;;  %v59_v16 = vld [vmem:[#allocation2 + $0xe8] sm:$0xff] }
0x10da   :  { %v1067_v39 = vor.u32 1.1754944e-38, %v1066_v17  ;;  %vm1065_vm5 = vcmp.eq.f32.partialorder %v1064_v2, 8.507059e+37  ;;  %v58_v17 = vld [vmem:[#allocation2 + $0xe0] sm:$0xff]  ;;  %v57_v2 = vld [vmem:[#allocation2 + $0xd8] sm:$0xff] }
0x10dd   :  { %v1398_v10 = vpop.eup %1397 }
0x10de   :  { %v1400_v62 = vpop.eup %1399  ;;  %v991_v54 = vmul.f32 %v1398_v10, %v989_v61  ;;  %vm996_vm12 = vweird.f32 %v1398_v10  ;;  %v49_v61 = vld [vmem:[#allocation2 + $0x98] sm:$0xff] }
0x10df   :  { %v1056_v11 = vmul.f32 %v1400_v62, %v1054_v1  ;;  %vm1061_vm13 = vweird.f32 %v1400_v62  ;;  %vm997_vm2 = vmor %vm995_vm14, %vm996_vm12  ;;  %v48_v1 = vld [vmem:[#allocation2 + $0x90] sm:$0xff]  ;;  %1174 = vmatpush.msra.mxu0 %v49_v61 }
0x10e0   :  { %v992_v0 = vsub.f32 1.0, %v991_v54  ;;  %vm1062_vm3 = vmor %vm1060_vm15, %vm1061_vm13 }
0x10e1   :  { %v1057_v12 = vsub.f32 1.0, %v1056_v11  ;;  %1175 = vmatpush.msra.mxu0 %v48_v1 }
0x10e2   :  { %v993_v50 = vmul.f32 %v1398_v10, %v992_v0  ;;  %v65_v0 = vld [vmem:[#allocation2 + $0x118] sm:$0xff] }
0x10e3   :  { %v1058_v37 = vmul.f32 %v1400_v62, %v1057_v12  ;;  %v64_v12 = vld [vmem:[#allocation2 + $0x110] sm:$0xff]  ;;  %1182 = vmatpush.msrb.mxu1 %v65_v0 }
0x10e4   :  { %v994_v13 = vadd.f32 %v1398_v10, %v993_v50  ;;  %v63_v50 = vld [vmem:[#allocation2 + $0x108] sm:$0xff] }
0x10e5   :  { %v1059_v15 = vadd.f32 %v1400_v62, %v1058_v37  ;;  %1183 = vmatpush.msrb.mxu1 %v64_v12  ;;  %v62_v37 = vld [vmem:[#allocation2 + $0x100] sm:$0xff] }
0x10e6   :  { %v998_v56 = vsel %vm997_vm2, %v1398_v10, %v994_v13  ;;  %v47_v10 = vld [vmem:[#allocation2 + $0x88] sm:$0xff]  ;;  %v61_v13 = vld [vmem:[#allocation2 + $0xf8] sm:$0xff] }
0x10e7   :  { %v1063_v3 = vsel %vm1062_vm3, %v1400_v62, %v1059_v15  ;;  %v1003_v14 = vsel %vm1000_vm4, %v1002_v4, %v998_v56  ;;  %v46_v62 = vld [vmem:[#allocation2 + $0x80] sm:$0xff]  ;;  %1176 = vmatpush.msra.mxu0 %v47_v10  ;;  %1184 = vmatpush.msrb.mxu1 %v63_v50  ;;  %v60_v15 = vld [vmem:[#allocation2 + $0xf0] sm:$0xff]  ;;  %v55_v4 = vld [vmem:[#allocation2 + $0xc8] sm:$0xff] }
0x10e8   :  { %v1068_v42 = vsel %vm1065_vm5, %v1067_v39, %v1063_v3  ;;  %v1006_v45 = vmul.f32 %v1003_v14, %v1822_v27  ;;  %v56_v3 = vld [vmem:[#allocation2 + $0xd0] sm:$0xff]  ;;  %v54_v39 = vld [vmem:[#allocation2 + $0xc0] sm:$0xff] }
0x10e9   :  { %v1071_v7 = vmul.f32 %v1068_v42, %v1817_v23  ;;  %1177 = vmatpush.msra.mxu0 %v46_v62  ;;  %1185 = vmatpush.msrb.mxu1 %v62_v37 }
0x10eb   :  { %1186 = vmatpush.msrb.mxu1 %v61_v13 }
0x10ed   :  { %1187 = vmatpush.msrb.mxu1 %v60_v15 }
0x10ef   :  { %1188 = vmatpush.msrb.mxu1 %v59_v16 }
0x10f1   :  { %1189 = vmatpush.msrb.mxu1 %v58_v17 }
0x10f3   :  { %1190 = vmatpush.msrb.mxu1 %v57_v2 }
0x10f5   :  { %1191 = vmatpush.msrb.mxu1 %v56_v3 }
0x10f7   :  { %1192 = vmatpush.msrb.mxu1 %v55_v4 }
0x10f9   :  { %1193 = vmatpush.msrb.mxu1 %v54_v39 }
0x1145   :  { %v1009_v40 = vpop.permute.xlu0 %1008 }
0x1146   :  { %v1074_v41 = vpop.permute.xlu1 %1073  ;;  %v1011_v43 = vmul.f32 %v1009_v40, %v1003_v14 }
0x1147   :  { %v1076_v44 = vmul.f32 %v1074_v41, %v1068_v42 }
0x1148   :  { %1013 = vrot.lane.b32.xlu2 %v1011_v43, %s1449_s2 }
0x1149   :  { %1078 = vrot.lane.b32.xlu0 %v1076_v44, %s1449_s2 }
0x11a2   :  { %v1014_v48 = vpop.permute.xlu2 %1013 }
0x11a3   :  { %v1016_v5 = vadd.f32 %v1014_v48, %v1006_v45  ;;  %v51_v45 = vld [vmem:[#allocation2 + $0xa8] sm:$0xff]  ;;  %v50_v48 = vld [vmem:[#allocation2 + $0xa0] sm:$0xff] }
0x11a5   :  { %1401 = vtanh.f32 %v1016_v5 }
0x11ab   :  { %v1402_v6 = vpop.eup %1401 }
0x11ac   :  { %1019 = vrot.lane.b32.xlu1 %v1402_v6, %s1449_s2 }
0x11bb   :  { %v1079_v8 = vpop.permute.xlu0 %1078 }
0x11bc   :  { %v1081_v9 = vadd.f32 %v1079_v8, %v1071_v7  ;;  %v1202_v8 = vlaneseq }
0x11be   :  { %1403 = vtanh.f32 %v1081_v9 }
0x11c4   :  { %v1404_v19 = vpop.eup %1403 }
0x11c5   :  { %1084 = vrot.lane.b32.xlu2 %v1404_v19, %s1449_s2  ;;  %v69_v19 = vld [vmem:[#allocation2 + $0x123] sm:$0x1] }
0x121e   :  { %v1020_v20 = vpop.permute.xlu1 %1019 }
0x121f   :  { %v1085_v21 = vpop.permute.xlu2 %1084  ;;  %v1022_v22 = vmul.f32 %v1020_v20, %v1003_v14  ;;  %v53_v14 = vld [vmem:[#allocation2 + $0xb8] sm:$0xff] }
0x1220   :  { %v1087_v24 = vmul.f32 %v1085_v21, %v1068_v42  ;;  %v52_v42 = vld [vmem:[#allocation2 + $0xb0] sm:$0xff]  ;;  %1194 = vmatpush.msrb.mxu1 %v53_v14 }
0x1221   :  { %1093 = vrot.lane.b32.xlu1 %v1022_v22, %s1450_s29 }
0x1222   :  { %1089 = vrot.lane.b32.xlu0 %v1087_v24, %s1451_s30  ;;  %1195 = vmatpush.msrb.mxu1 %v52_v42 }
0x1224   :  { %1196 = vmatpush.msrb.mxu1 %v51_v45 }
0x1226   :  { %1197 = vmatpush.msrb.mxu1 %v50_v48 }
0x1293   :  { %v1094_v25 = vpop.permute.xlu1 %1093 }
0x1294   :  { %v1090_v26 = vpop.permute.xlu0 %1089 }
0x1295   :  { %v1222_v27 = vsel %vm79_vm0, %v1090_v26, 0.0  ;;  %v1096_v23 = vsel %vm79_vm0, %v1090_v26, %v1094_v25 }
0x1296   :  { %1223 = vst [vmem:[%s1885_s3 + $0x1] sm:$0x1] %v1222_v27  ;;  %1275 = vmatmul.msk.f32.vlgmr.msrb.gmra.mxu3 %vm81_vm1, %v1096_v23 }
0x1319   :  { %v1117_v28 = vpop.f32.mrf.mxu3 }
0x131a   :  { %v1118_v29 = vadd.f32 %v1836_v52, %v1117_v28 }
0x131c   :  { %1405 = vtanh.f32 %v1118_v29  ;;  %v1276_v31 = vmul.f32 -1.442695, %v1118_v29 }
0x131e   :  { %1407 = vpow2.f32 %v1276_v31 }
0x1322   :  { %v1406_v30 = vpop.eup %1405 }
0x1323   :  { %1142 = vrot.lane.b32.xlu2 %v1406_v30, %s1449_s2 }
0x1324   :  { %v1408_v33 = vpop.eup %1407 }
0x1325   :  { %v1123_v32 = vadd.f32 1.0, %v1408_v33 }
0x1327   :  { %1409 = vrcp.f32 %v1123_v32  ;;  %v1135_v47 = vand.u32 2147483648, %v1123_v32  ;;  %vm1129_vm1 = vweird.f32 %v1123_v32  ;;  %v1133_v49 = vand.u32 2147483647, %v1123_v32 }
0x1329   :  { %v1136_v51 = vor.u32 1.1754944e-38, %v1135_v47  ;;  %vm1134_vm8 = vcmp.eq.f32.partialorder %v1133_v49, 8.507059e+37 }
0x132d   :  { %v1410_v34 = vpop.eup %1409 }
0x132e   :  { %v1125_v35 = vmul.f32 %v1410_v34, %v1123_v32  ;;  %vm1130_vm6 = vweird.f32 %v1410_v34 }
0x132f   :  { %vm1131_vm7 = vmor %vm1129_vm1, %vm1130_vm6 }
0x1330   :  { %v1126_v36 = vsub.f32 1.0, %v1125_v35 }
0x1332   :  { %v1127_v38 = vmul.f32 %v1410_v34, %v1126_v36 }
0x1334   :  { %v1128_v46 = vadd.f32 %v1410_v34, %v1127_v38 }
0x1336   :  { %v1132_v52 = vsel %vm1131_vm7, %v1410_v34, %v1128_v46 }
0x1337   :  { %v1137_v55 = vsel %vm1134_vm8, %v1136_v51, %v1132_v52 }
0x1338   :  { %v1140_v58 = vmul.f32 %v1137_v55, %v1016_v5  ;;  %v68_v5 = vld [vmem:[#allocation2 + $0x122] sm:$0x1] }
0x137d   :  { %v1143_v53 = vpop.permute.xlu2 %1142 }
0x137e   :  { %v1145_v57 = vmul.f32 %v1143_v53, %v1137_v55 }
0x1380   :  { %1147 = vrot.lane.b32.xlu0 %v1145_v57, %s1449_s2 }
0x13f2   :  { %v1148_v59 = vpop.permute.xlu0 %1147 }
0x13f3   :  { %v1150_v60 = vadd.f32 %v1148_v59, %v1140_v58 }
0x13f5   :  { %1411 = vtanh.f32 %v1150_v60 }
0x13fb   :  { %v1412_v63 = vpop.eup %1411 }
0x13fc   :  { %1153 = vrot.lane.b32.xlu1 %v1412_v63, %s1449_s2 }
0x146e   :  { %v1154_v54 = vpop.permute.xlu1 %1153 }
0x146f   :  { %v1156_v11 = vmul.f32 %v1154_v54, %v1137_v55 }
0x1471   :  { %1158 = vrot.lane.b32.xlu2 %v1156_v11, %s1451_s30 }
0x1479   :  { %1225 = vrot.lane.b32.xlu2 %v1081_v9, %s1450_s29  ;;  %v1203_v9 = vand.u32 127, %v1202_v8 }
0x147b   :  { %vm1204_vm9 = vcmp.lt.s32.totalorder %v1203_v9, 16 }
0x1481   :  { %1234 = vrot.lane.b32.xlu2 %v1150_v60, %s1450_s29 }
0x14cb   :  { %v1159_v18 = vpop.permute.xlu2 %1158 }
0x14cc   :  { %v1231_v56 = vsel %vm79_vm0, %v1159_v18, 0.0  ;;  %1277 = vmatmul.msk.f32.vlgmr.msra.gmra.mxu0 %vm79_vm0, %v1159_v18 }
0x14cd   :  { %1232 = vst [vmem:[%s1885_s3 + $0x3] sm:$0x1] %v1231_v56 }
0x14d3   :  { %v1226_v40 = vpop.permute.xlu2 %1225 }
0x14d4   :  { %v1228_v41 = vsel %vm79_vm0, %v1226_v40, 0.0 }
0x14d5   :  { %1229 = vst [vmem:[%s1885_s3 + $0x2] sm:$0x1] %v1228_v41 }
0x14db   :  { %v1235_v43 = vpop.permute.xlu2 %1234 }
0x14dc   :  { %v1237_v44 = vsel %vm79_vm0, %v1235_v43, 0.0 }
0x14dd   :  { %1238 = vst [vmem:[%s1885_s3 + $0x4] sm:$0x1] %v1237_v44 }
0x1549   :  { %v1179_v6 = vpop.f32.mrf.mxu0 }
0x154a   :  { %v1180_v7 = vadd.f32 %v1179_v6, %v68_v5 }
0x154c   :  { %1198 = vmatmul.f32.vlgmr.msrb.gmra.mxu1 %v1180_v7 }
0x15c9   :  { %v1199_v20 = vpop.f32.mrf.mxu1 }
0x15ca   :  { %v1200_v21 = vadd.f32 %v1199_v20, %v69_v19 }
0x15cc   :  { %v1205_v22 = vsel %vm1204_vm9, %v1200_v21, -inf }
0x15cd   :  { %v1207_v24 = vsel %vm1206_vm10, %v1205_v22, -inf }
0x15ce   :  { %1208 = vmax.xlane.f32.xlu0 %v1207_v24 }
0x1641   :  { %v1209_v25 = vpop.xlane.xlu0 %1208 }
0x1642   :  { %v1210_v26 = vsub.f32 %v1200_v21, %v1209_v25 }
0x1644   :  { %v1211_v27 = vmul.f32 1.442695, %v1210_v26 }
0x1646   :  { %1413 = vpow2.f32 %v1211_v27 }
0x164c   :  { %v1414_v23 = vpop.eup %1413 }
0x164d   :  { %v1213_v28 = vsel %vm1204_vm9, %v1414_v23, 0.0 }
0x164e   :  { %v1214_v29 = vsel %vm1206_vm10, %v1213_v28, 0.0 }
0x164f   :  { %1215 = vadd.xlane.f32.xlu1 %v1214_v29 }
0x16c2   :  { %v1216_v30 = vpop.xlane.xlu1 %1215 }
0x16c3   :  { %1415 = vlog2.f32 %v1216_v30 }
0x16c9   :  { %v1416_v31 = vpop.eup %1415 }
0x16ca   :  { %v1218_v33 = vmul.f32 0.6931472, %v1416_v31 }
0x16cc   :  { %v1219_v32 = vsub.f32 %v1210_v26, %v1218_v33 }
0x16ce   :  { %v1220_v34 = vsel %vm1204_vm9, %v1219_v32, 0.0 }
0x16cf   :  { %1221 = vst [vmem:[%s1885_s3] sm:$0x1] %v1220_v34 }
0x16d0   :  { %1244 = vsyncpa [#allocation3], 1 }

</bundles_post_ra>
